<compile_context>
chip_gen: v6e
topology: v6e:2x2x1
jax: 0.10.0
libtpu: 0.0.40
codegen_flags: <defaults>
</compile_context>

<pallas_src>
import functools
import numpy as np
import jax
import jax.numpy as jnp
from jax.experimental import pallas as pl
from jax.experimental.pallas import tpu as pltpu


# ----------------------------- in-kernel math helpers -----------------------------

def _layernorm(x, gamma, beta, eps=1e-5):
    mu = jnp.mean(x, axis=-1, keepdims=True)
    var = jnp.mean(jnp.square(x - mu), axis=-1, keepdims=True)
    return (x - mu) * jax.lax.rsqrt(var + eps) * gamma + beta


def _softmax(a):
    m = jnp.max(a, axis=-1, keepdims=True)
    e = jnp.exp(a - m)
    s = jnp.sum(e, axis=-1, keepdims=True)
    return e * pl.reciprocal(s, approx=True)


def _window_self_attn(x_2d, wb, n, g_ref, b_ref, wqkv_ref, bqkv_ref, bias_ref,
                      wproj_ref, bproj_ref, num_heads, scale):
    """norm1 + Swin window self-attention (+rel-pos bias) + output proj on a block of windows.

    x_2d: (M, C) f32 with M = wb*n.  Weights are bf16, accumulation f32.
    The head concat is folded into the output projection (per-head accumulation).
    """
    m, c = x_2d.shape
    hd = c // num_heads
    xn = _layernorm(x_2d, g_ref[0], b_ref[0]).astype(jnp.bfloat16)
    qkv = jnp.dot(xn, wqkv_ref[...], preferred_element_type=jnp.float32) + bqkv_ref[0]   # (M, 3C) f32
    acc = jnp.zeros((m, c), jnp.float32)
    for h in range(num_heads):
        q = (qkv[:, h * hd:(h + 1) * hd] * scale).reshape(wb, n, hd).astype(jnp.bfloat16)
        k = qkv[:, c + h * hd:c + (h + 1) * hd].reshape(wb, n, hd).astype(jnp.bfloat16)
        v = qkv[:, 2 * c + h * hd:2 * c + (h + 1) * hd].reshape(wb, n, hd).astype(jnp.bfloat16)
        s = jax.lax.dot_general(q, k, (((2,), (2,)), ((0,), (0,))),
                                preferred_element_type=jnp.float32)            # (wb, n, n)
        p = _softmax(s + bias_ref[h])
        o = jax.lax.dot_general(p.astype(jnp.bfloat16), v, (((2,), (1,)), ((0,), (0,))),
                                preferred_element_type=jnp.float32)            # (wb, n, hd)
        acc = acc + jnp.dot(o.reshape(m, hd).astype(jnp.bfloat16), wproj_ref[h],
                            preferred_element_type=jnp.float32)
    return acc + bproj_ref[0]                                                  # (M, C) f32


def _cross_attn(q_src_2d, kv_src_2d, wb, n, wq_ref, bq_ref, wkv_ref, bkv_ref,
                wo_ref, bo_ref, num_heads, scale):
    """Multi-head cross attention (q<-x1; k/v<-x2 with `pre` pre-composed into the fused kv weight)."""
    # TODO(synk): SwinDAttention (deformable, n_groups=3) definition not provided; approximated
    #             with a standard multi-head cross attention of matching parameter shapes.
    m, c = q_src_2d.shape
    hd = c // num_heads
    q = jnp.dot(q_src_2d.astype(jnp.bfloat16), wq_ref[...],
                preferred_element_type=jnp.float32) + bq_ref[0]                # (M, C)
    kv = jnp.dot(kv_src_2d.astype(jnp.bfloat16), wkv_ref[...],
                 preferred_element_type=jnp.float32) + bkv_ref[0]              # (M, 2C)
    acc = jnp.zeros((m, c), jnp.float32)
    for h in range(num_heads):
        qh = (q[:, h * hd:(h + 1) * hd] * scale).reshape(wb, n, hd).astype(jnp.bfloat16)
        kh = kv[:, h * hd:(h + 1) * hd].reshape(wb, n, hd).astype(jnp.bfloat16)
        vh = kv[:, c + h * hd:c + (h + 1) * hd].reshape(wb, n, hd).astype(jnp.bfloat16)
        s = jax.lax.dot_general(qh, kh, (((2,), (2,)), ((0,), (0,))),
                                preferred_element_type=jnp.float32)
        p = _softmax(s)
        o = jax.lax.dot_general(p.astype(jnp.bfloat16), vh, (((2,), (1,)), ((0,), (0,))),
                                preferred_element_type=jnp.float32)
        acc = acc + jnp.dot(o.reshape(m, hd).astype(jnp.bfloat16), wo_ref[h],
                            preferred_element_type=jnp.float32)
    return acc + bo_ref[0]                                                     # (M, C) f32


def _ln_mlp_body(x, g_ref, b_ref, w1_ref, b1_ref, w2_ref, b2_ref):
    """MLP(norm2(x)): fc1 -> GELU -> fc2 on an (M, C) f32 block."""
    xn = _layernorm(x, g_ref[0], b_ref[0])
    h = jnp.dot(xn.astype(jnp.bfloat16), w1_ref[...],
                preferred_element_type=jnp.float32) + b1_ref[0]
    # TODO(synk): torch nn.GELU default is erf-exact; tanh approximation used (EUP-friendly).
    h = jax.nn.gelu(h, approximate=True)
    return jnp.dot(h.astype(jnp.bfloat16), w2_ref[...],
                   preferred_element_type=jnp.float32) + b2_ref[0]


# ----------------------------- Pallas kernels -----------------------------

def _attn_cross_kernel(x1_ref, x2_ref, g1_ref, b1_ref, wqkv_ref, bqkv_ref,
                       bias_ref, wproj_ref, bproj_ref,
                       wq_ref, bq_ref, wkv_ref, bkv_ref, wo_ref, bo_ref,
                       attn_out_ref, y_out_ref, *, num_heads, scale):
    """Fused per-window-block: self-attn + shortcut residual + cross attention (+ CVA residual)."""
    wb, n, c1 = x1_ref.shape
    c2 = x2_ref.shape[-1]
    x1 = x1_ref[...].reshape(wb * n, c1).astype(jnp.float32)
    x2 = x2_ref[...].reshape(wb * n, c2).astype(jnp.float32)

    attn_w = _window_self_attn(x1, wb, n, g1_ref, b1_ref, wqkv_ref, bqkv_ref,
                               bias_ref, wproj_ref, bproj_ref, num_heads, scale)
    attn_out_ref[...] = attn_w.reshape(wb, n, c1).astype(attn_out_ref.dtype)

    # shortcut residual in window layout: windows(shortcut + out) = windows(shortcut) + attn_w
    x1a = x1 + attn_w
    y = x1a + _cross_attn(x1a, x2, wb, n, wq_ref, bq_ref, wkv_ref, bkv_ref,
                          wo_ref, bo_ref, num_heads, scale)
    y_out_ref[...] = y.reshape(wb, n, c1).astype(y_out_ref.dtype)


def _attn_self_kernel(x1_ref, g1_ref, b1_ref, wqkv_ref, bqkv_ref, bias_ref,
                      wproj_ref, bproj_ref, attn_out_ref, *, num_heads, scale):
    """Window self-attention only (last_view path)."""
    wb, n, c1 = x1_ref.shape
    x1 = x1_ref[...].reshape(wb * n, c1).astype(jnp.float32)
    attn_w = _window_self_attn(x1, wb, n, g1_ref, b1_ref, wqkv_ref, bqkv_ref,
                               bias_ref, wproj_ref, bproj_ref, num_heads, scale)
    attn_out_ref[...] = attn_w.reshape(wb, n, c1).astype(attn_out_ref.dtype)


def _res1_ln_mlp_kernel(x_ref, r1_ref, g_ref, b_ref, w1_ref, b1_ref, w2_ref, b2_ref, o_ref):
    """x = x + r1;  out = x + MLP(norm2(x))  — last_view path (shortcut residual fused in)."""
    x = x_ref[...].astype(jnp.float32) + r1_ref[...].astype(jnp.float32)
    o_ref[...] = (x + _ln_mlp_body(x, g_ref, b_ref, w1_ref, b1_ref, w2_ref, b2_ref)).astype(o_ref.dtype)


def _res2_ln_mlp_kernel(x_ref, r1_ref, r2_ref, g_ref, b_ref, w1_ref, b1_ref, w2_ref, b2_ref, o_ref):
    """x = x + r1 + r2;  out = x + MLP(norm2(x))  — cross-view path (both residuals fused in)."""
    x = (x_ref[...].astype(jnp.float32) + r1_ref[...].astype(jnp.float32)
         + r2_ref[...].astype(jnp.float32))
    o_ref[...] = (x + _ln_mlp_body(x, g_ref, b_ref, w1_ref, b1_ref, w2_ref, b2_ref)).astype(o_ref.dtype)


# ----------------------------- Pallas wrappers -----------------------------

def _bcast_spec(shape):
    nd = len(shape)
    return pl.BlockSpec(shape, lambda i, _nd=nd: (0,) * _nd)


def _pick_window_block(n_windows, n_tokens):
    """Windows per block: target ~128 rows on the MXU, keep >=2 grid steps when possible (v7x)."""
    max_wb = max(1, 128 // n_tokens)
    cands = [d for d in range(1, n_windows + 1) if n_windows % d == 0 and d <= max_wb]
    wb = max(cands)
    if n_windows // wb < 2:
        two_step = [d for d in cands if n_windows // d >= 2]
        if two_step:
            wb = max(two_step)
    return wb


def _pick_row_block(rows):
    """Rows per block for the MLP kernel: 8-aligned, <=128, keep >=2 grid steps when possible."""
    cands = [d for d in range(8, min(rows, 128) + 1, 8) if rows % d == 0]
    if not cands:
        return rows
    rb = max(cands)
    if rows // rb < 2:
        two_step = [d for d in cands if rows // d >= 2]
        if two_step:
            rb = max(two_step)
    return rb


def fused_win_cross_attention(x1w, x2w, p, num_heads):
    nW, N, C1 = x1w.shape
    nW2, N2, C2 = x2w.shape
    assert nW == nW2 and N == N2, "x1/x2 window grids must match for cross attention"
    hd = C1 // num_heads
    scale = hd ** -0.5
    wb = _pick_window_block(nW, N)
    kernel = functools.partial(_attn_cross_kernel, num_heads=num_heads, scale=scale)
    return pl.pallas_call(
        kernel,
        out_shape=(jax.ShapeDtypeStruct((nW, N, C1), x1w.dtype),
                   jax.ShapeDtypeStruct((nW, N, C1), x1w.dtype)),
        grid=(nW // wb,),
        in_specs=[
            pl.BlockSpec((wb, N, C1), lambda i: (i, 0, 0)),
            pl.BlockSpec((wb, N, C2), lambda i: (i, 0, 0)),
            _bcast_spec((1, C1)), _bcast_spec((1, C1)),
            _bcast_spec((C1, 3 * C1)), _bcast_spec((1, 3 * C1)),
            _bcast_spec((num_heads, N, N)),
            _bcast_spec((num_heads, hd, C1)), _bcast_spec((1, C1)),
            _bcast_spec((C1, C1)), _bcast_spec((1, C1)),
            _bcast_spec((C2, 2 * C1)), _bcast_spec((1, 2 * C1)),
            _bcast_spec((num_heads, hd, C1)), _bcast_spec((1, C1)),
        ],
        out_specs=(pl.BlockSpec((wb, N, C1), lambda i: (i, 0, 0)),
                   pl.BlockSpec((wb, N, C1), lambda i: (i, 0, 0))),
        compiler_params=pltpu.CompilerParams(dimension_semantics=("parallel",)),
    )(x1w, x2w, p['norm1_g'], p['norm1_b'], p['attn_wqkv'], p['attn_bqkv'],
      p['rel_bias'], p['attn_wproj_h'], p['attn_bproj'],
      p['cva_wq'], p['cva_bq'], p['cva_wkv_fused'], p['cva_bkv_fused'],
      p['cva_wo_h'], p['cva_bo'])


def win_self_attention(x1w, p, num_heads):
    nW, N, C1 = x1w.shape
    hd = C1 // num_heads
    scale = hd ** -0.5
    wb = _pick_window_block(nW, N)
    kernel = functools.partial(_attn_self_kernel, num_heads=num_heads, scale=scale)
    return pl.pallas_call(
        kernel,
        out_shape=jax.ShapeDtypeStruct((nW, N, C1), x1w.dtype),
        grid=(nW // wb,),
        in_specs=[
            pl.BlockSpec((wb, N, C1), lambda i: (i, 0, 0)),
            _bcast_spec((1, C1)), _bcast_spec((1, C1)),
            _bcast_spec((C1, 3 * C1)), _bcast_spec((1, 3 * C1)),
            _bcast_spec((num_heads, N, N)),
            _bcast_spec((num_heads, hd, C1)), _bcast_spec((1, C1)),
        ],
        out_specs=pl.BlockSpec((wb, N, C1), lambda i: (i, 0, 0)),
        compiler_params=pltpu.CompilerParams(dimension_semantics=("parallel",)),
    )(x1w, p['norm1_g'], p['norm1_b'], p['attn_wqkv'], p['attn_bqkv'],
      p['rel_bias'], p['attn_wproj_h'], p['attn_bproj'])


def residual_ln_mlp(x, residuals, p):
    """x += sum(residuals); x += MLP(norm2(x)) — residual adds fused into the MLP kernel."""
    B, L, C = x.shape
    Hd = p['fc1_w'].shape[1]
    rows = B * L
    rb = _pick_row_block(rows)
    x2d = x.reshape(rows, C)
    res2d = [r.reshape(rows, C) for r in residuals]
    n_res = len(res2d)
    kernel = _res1_ln_mlp_kernel if n_res == 1 else _res2_ln_mlp_kernel
    row_spec = pl.BlockSpec((rb, C), lambda i: (i, 0))
    in_specs = [row_spec] + [row_spec] * n_res + [
        _bcast_spec((1, C)), _bcast_spec((1, C)),
        _bcast_spec((C, Hd)), _bcast_spec((1, Hd)),
        _bcast_spec((Hd, C)), _bcast_spec((1, C)),
    ]
    out = pl.pallas_call(
        kernel,
        out_shape=jax.ShapeDtypeStruct((rows, C), x.dtype),
        grid=(rows // rb,),
        in_specs=in_specs,
        out_specs=row_spec,
        compiler_params=pltpu.CompilerParams(dimension_semantics=("parallel",)),
    )(x2d, *res2d, p['norm2_g'], p['norm2_b'], p['fc1_w'], p['fc1_b'], p['fc2_w'], p['fc2_b'])
    return out.reshape(B, L, C)


# ----------------------------- plain-JAX glue -----------------------------

def window_partition(x, ws):
    B, H, W, C = x.shape
    x = x.reshape(B, H // ws, ws, W // ws, ws, C)
    return jnp.transpose(x, (0, 1, 3, 2, 4, 5)).reshape(-1, ws, ws, C)


def window_reverse(windows, ws, H, W):
    B = windows.shape[0] // ((H // ws) * (W // ws))
    x = windows.reshape(B, H // ws, W // ws, ws, ws, -1)
    return jnp.transpose(x, (0, 1, 3, 2, 4, 5)).reshape(B, H, W, -1)


def relative_position_index(ws):
    coords = np.stack(np.meshgrid(np.arange(ws), np.arange(ws), indexing='ij'))
    coords_flat = coords.reshape(2, -1)
    rel = coords_flat[:, :, None] - coords_flat[:, None, :]
    rel = rel.transpose(1, 2, 0).astype(np.int32)
    rel[:, :, 0] += ws - 1
    rel[:, :, 1] += ws - 1
    rel[:, :, 0] *= 2 * ws - 1
    return rel.sum(-1)


def init_cross_swin_block_params(key, dim1, dim2, num_heads, window_size, mlp_ratio, last_view):
    N = window_size * window_size
    hd = dim1 // num_heads
    ks = jax.random.split(key, 10)
    wdt = jnp.bfloat16                     # matmul weight storage dtype (MXU-native)

    def lin(k, fi, fo):
        w = jax.random.normal(k, (fi, fo), jnp.float32) * 0.02
        b = jnp.zeros((1, fo), jnp.float32)
        return w, b

    p = {}
    p['norm1_g'] = jnp.ones((1, dim1), jnp.float32)
    p['norm1_b'] = jnp.zeros((1, dim1), jnp.float32)
    wqkv, bqkv = lin(ks[0], dim1, 3 * dim1)
    p['attn_wqkv'] = wqkv.astype(wdt)
    p['attn_bqkv'] = bqkv
    wproj, bproj = lin(ks[1], dim1, dim1)
    p['attn_wproj_h'] = wproj.reshape(num_heads, hd, dim1).astype(wdt)   # per-head slabs
    p['attn_bproj'] = bproj
    table = jax.random.normal(ks[2], ((2 * window_size - 1) ** 2, num_heads), jnp.float32) * 0.02
    idx = relative_position_index(window_size)
    rel_bias = table[idx.reshape(-1)].reshape(N, N, num_heads)
    p['rel_bias'] = jnp.transpose(rel_bias, (2, 0, 1))                   # (num_heads, N, N)
    p['norm2_g'] = jnp.ones((1, dim1), jnp.float32)
    p['norm2_b'] = jnp.zeros((1, dim1), jnp.float32)
    hidden = int(dim1 * mlp_ratio)
    w1, b1 = lin(ks[3], dim1, hidden)
    w2, b2 = lin(ks[4], hidden, dim1)
    p['fc1_w'] = w1.astype(wdt); p['fc1_b'] = b1
    p['fc2_w'] = w2.astype(wdt); p['fc2_b'] = b2
    if not last_view:
        pre_w, pre_b = lin(ks[5], dim2, dim1)
        wq, bq = lin(ks[6], dim1, dim1)
        wk, bk = lin(ks[7], dim1, dim1)
        wv, bv = lin(ks[8], dim1, dim1)
        wo, bo = lin(ks[9], dim1, dim1)
        p['cva_wq'] = wq.astype(wdt); p['cva_bq'] = bq
        # pre-compose the affine `pre` linear into k/v and fuse k/v into a single (C2, 2*C1) weight:
        #   k(x2) = (x2@pre_w + pre_b)@wk + bk,  v(x2) analogous -> kv(x2) = x2@[pre_w@wk | pre_w@wv] + [..]
        p['cva_wkv_fused'] = jnp.concatenate([pre_w @ wk, pre_w @ wv], axis=1).astype(wdt)
        p['cva_bkv_fused'] = jnp.concatenate([pre_b @ wk + bk, pre_b @ wv + bv], axis=1)
        p['cva_wo_h'] = wo.reshape(num_heads, hd, dim1).astype(wdt)
        p['cva_bo'] = bo
    return p


def cross_swin_block_forward(x1, x2, p, input_resolution, window_size, num_heads, last_view):
    H, W = input_resolution
    ws = min(window_size, min(input_resolution))
    B1, L1, C1 = x1.shape
    T1 = L1 // (H * W)

    x1_img = x1.reshape(B1, T1 * H, W, C1)
    x1_windows = window_partition(x1_img, ws).reshape(-1, ws * ws, C1)

    if not last_view:
        B2, L2, C2 = x2.shape
        T2 = L2 // (H * W)
        x2_img = x2.reshape(B2, T2 * H, W, C2)
        x2_windows = window_partition(x2_img, ws).reshape(-1, ws * ws, C2)
        # fused kernel: norm1 + self-attn, shortcut residual (window layout), cross attn + CVA residual
        attn_w, y_w = fused_win_cross_attention(x1_windows, x2_windows, p, num_heads)
    else:
        attn_w = win_self_attention(x1_windows, p, num_heads)
        y_w = None

    attn_img = attn_w.reshape(-1, ws, ws, C1)
    out = window_reverse(attn_img, ws, T1 * H, W).reshape(B1, L1, C1)

    residuals = [out]                                     # shortcut residual (sequence layout)
    if not last_view:
        # '(b n) ws c -> b (n ws) c' (window-order concat, exactly as in the PyTorch reference)
        residuals.append(y_w.reshape(B1, -1, C1))
    # residual adds + norm2 + MLP + residual, all fused in one kernel
    x1 = residual_ln_mlp(x1, residuals, p)
    return x1, out


def cross_three_view_forward(xs, params, resolutions, window_sizes, heads):
    x0, x1, x2 = xs
    x2, out2 = cross_swin_block_forward(x2, x2, params[2], resolutions[2], window_sizes[2], heads[2], last_view=True)
    x1, out1 = cross_swin_block_forward(x1, out2, params[1], resolutions[1], window_sizes[1], heads[1], last_view=False)
    x0, _ = cross_swin_block_forward(x0, out1, params[0], resolutions[0], window_sizes[0], heads[0], last_view=False)
    return [x0, x1, x2]


# ----------------------------- main -----------------------------

if __name__ == "__main__":
    key = jax.random.PRNGKey(0)
    B = 2
    cur_stage = 0
    mlp_ratio = 4.0
    view_configs = [
        dict(hidden_size=[32], num_heads=[4], window_size=4, temporal_ratio=1),
        dict(hidden_size=[48], num_heads=[4], window_size=4, temporal_ratio=1),
        dict(hidden_size=[64], num_heads=[4], window_size=4, temporal_ratio=1),
    ]
    resolutions = [(8, 8), (8, 8), (8, 8)]
    window_sizes = [view_configs[i]['window_size'] for i in range(3)]
    heads = [view_configs[i]['num_heads'][cur_stage] for i in range(3)]
    dims = [view_configs[i]['hidden_size'][cur_stage] for i in range(3)]

    kp, kx = jax.random.split(key)
    kp1, kp2, kp3 = jax.random.split(kp, 3)
    params = [
        init_cross_swin_block_params(kp1, dims[0], dims[1], heads[0], window_sizes[0], mlp_ratio, last_view=False),
        init_cross_swin_block_params(kp2, dims[1], dims[2], heads[1], window_sizes[1], mlp_ratio, last_view=False),
        init_cross_swin_block_params(kp3, dims[2], dims[2], heads[2], window_sizes[2], mlp_ratio, last_view=True),
    ]

    kx0, kx1, kx2 = jax.random.split(kx, 3)
    xs = [
        jax.random.normal(kx0, (B, resolutions[0][0] * resolutions[0][1], dims[0]), jnp.float32),
        jax.random.normal(kx1, (B, resolutions[1][0] * resolutions[1][1], dims[1]), jnp.float32),
        jax.random.normal(kx2, (B, resolutions[2][0] * resolutions[2][1], dims[2]), jnp.float32),
    ]

    outs = cross_three_view_forward(xs, params, resolutions, window_sizes, heads)
    for o in outs:
        jax.block_until_ready(o)
    assert outs[0].shape == xs[0].shape and outs[1].shape == xs[1].shape and outs[2].shape == xs[2].shape
    assert all(bool(jnp.all(jnp.isfinite(o))) for o in outs)
    print("KERNEL_OK")
</pallas_src>

<mosaic_0001>
module attributes {stable_mosaic.version = 11 : i64} {
  func.func @_attn_self_kernel(%arg0: i32, %arg1: memref<4x16x64xf32, #tpu.memory_space<vmem>>, %arg2: memref<1x64xf32, #tpu.memory_space<vmem>>, %arg3: memref<1x64xf32, #tpu.memory_space<vmem>>, %arg4: memref<64x192xbf16, #tpu.memory_space<vmem>>, %arg5: memref<1x192xf32, #tpu.memory_space<vmem>>, %arg6: memref<4x16x16xf32, #tpu.memory_space<vmem>>, %arg7: memref<4x16x64xbf16, #tpu.memory_space<vmem>>, %arg8: memref<1x64xf32, #tpu.memory_space<vmem>>, %arg9: memref<4x16x64xf32, #tpu.memory_space<vmem>>) attributes {dimension_semantics = [#tpu.dimension_semantics<parallel>], iteration_bounds = array<i64: 2>, scalar_prefetch = 0 : i64, scratch_operands = 0 : i64, tpu.core_type = #tpu.core_type<tc>, window_params = [{transform_indices = @transform_0, window_bounds = array<i64: 4, 16, 64>}, {pipeline_mode = #tpu.pipeline_mode<synchronous>, transform_indices = @transform_1, window_bounds = array<i64: 1, 64>}, {pipeline_mode = #tpu.pipeline_mode<synchronous>, transform_indices = @transform_2, window_bounds = array<i64: 1, 64>}, {pipeline_mode = #tpu.pipeline_mode<synchronous>, transform_indices = @transform_3, window_bounds = array<i64: 64, 192>}, {pipeline_mode = #tpu.pipeline_mode<synchronous>, transform_indices = @transform_4, window_bounds = array<i64: 1, 192>}, {pipeline_mode = #tpu.pipeline_mode<synchronous>, transform_indices = @transform_5, window_bounds = array<i64: 4, 16, 16>}, {pipeline_mode = #tpu.pipeline_mode<synchronous>, transform_indices = @transform_6, window_bounds = array<i64: 4, 16, 64>}, {pipeline_mode = #tpu.pipeline_mode<synchronous>, transform_indices = @transform_7, window_bounds = array<i64: 1, 64>}, {transform_indices = @transform_8, window_bounds = array<i64: 4, 16, 64>}]} {
    %c0 = arith.constant 0 : index
    %c0_0 = arith.constant 0 : index
    %c0_1 = arith.constant 0 : index
    %0 = vector.load %arg1[%c0, %c0_0, %c0_1] : memref<4x16x64xf32, #tpu.memory_space<vmem>>, vector<4x16x64xf32>
    %1 = vector.shape_cast %0 : vector<4x16x64xf32> to vector<64x64xf32>
    %c0_2 = arith.constant 0 : index
    %c0_3 = arith.constant 0 : index
    %2 = vector.load %arg2[%c0_2, %c0_3] : memref<1x64xf32, #tpu.memory_space<vmem>>, vector<1x64xf32>
    %3 = vector.shape_cast %2 : vector<1x64xf32> to vector<64xf32>
    %c0_4 = arith.constant 0 : index
    %c0_5 = arith.constant 0 : index
    %4 = vector.load %arg3[%c0_4, %c0_5] : memref<1x64xf32, #tpu.memory_space<vmem>>, vector<1x64xf32>
    %5 = vector.shape_cast %4 : vector<1x64xf32> to vector<64xf32>
    %cst = arith.constant dense<0.000000e+00> : vector<64xf32>
    %6 = vector.multi_reduction <add>, %1, %cst [1] : vector<64x64xf32> to vector<64xf32>
    %7 = vector.shape_cast %6 : vector<64xf32> to vector<64x1xf32>
    %cst_6 = arith.constant 6.400000e+01 : f32
    %8 = vector.broadcast %cst_6 : f32 to vector<64x1xf32>
    %9 = arith.divf %7, %8 : vector<64x1xf32>
    %10 = vector.broadcast %9 : vector<64x1xf32> to vector<64x64xf32>
    %11 = arith.subf %1, %10 : vector<64x64xf32>
    %12 = arith.mulf %11, %11 : vector<64x64xf32>
    %cst_7 = arith.constant dense<0.000000e+00> : vector<64xf32>
    %13 = vector.multi_reduction <add>, %12, %cst_7 [1] : vector<64x64xf32> to vector<64xf32>
    %14 = vector.shape_cast %13 : vector<64xf32> to vector<64x1xf32>
    %cst_8 = arith.constant 6.400000e+01 : f32
    %15 = vector.broadcast %cst_8 : f32 to vector<64x1xf32>
    %16 = arith.divf %14, %15 : vector<64x1xf32>
    %17 = vector.broadcast %9 : vector<64x1xf32> to vector<64x64xf32>
    %18 = arith.subf %1, %17 : vector<64x64xf32>
    %cst_9 = arith.constant 9.99999974E-6 : f32
    %19 = vector.broadcast %cst_9 : f32 to vector<64x1xf32>
    %20 = arith.addf %16, %19 : vector<64x1xf32>
    %21 = math.rsqrt %20 : vector<64x1xf32>
    %22 = vector.broadcast %21 : vector<64x1xf32> to vector<64x64xf32>
    %23 = arith.mulf %18, %22 : vector<64x64xf32>
    %24 = vector.shape_cast %3 : vector<64xf32> to vector<1x64xf32>
    %25 = vector.broadcast %24 : vector<1x64xf32> to vector<64x64xf32>
    %26 = arith.mulf %23, %25 : vector<64x64xf32>
    %27 = vector.shape_cast %5 : vector<64xf32> to vector<1x64xf32>
    %28 = vector.broadcast %27 : vector<1x64xf32> to vector<64x64xf32>
    %29 = arith.addf %26, %28 : vector<64x64xf32>
    %30 = arith.truncf %29 : vector<64x64xf32> to vector<64x64xbf16>
    %c0_10 = arith.constant 0 : index
    %c0_11 = arith.constant 0 : index
    %31 = vector.load %arg4[%c0_10, %c0_11] : memref<64x192xbf16, #tpu.memory_space<vmem>>, vector<64x192xbf16>
    %cst_12 = arith.constant dense<0.000000e+00> : vector<64x192xf32>
    %32 = tpu.matmul %30, %31, %cst_12 {dimension_numbers = #tpu.dot_dimension_numbers<[1], [0], [0], [1], [0, 0, 1, 1], [], []>} : vector<64x64xbf16>, vector<64x192xbf16>, vector<64x192xf32> -> vector<64x192xf32>
    %c0_13 = arith.constant 0 : index
    %c0_14 = arith.constant 0 : index
    %33 = vector.load %arg5[%c0_13, %c0_14] : memref<1x192xf32, #tpu.memory_space<vmem>>, vector<1x192xf32>
    %34 = vector.shape_cast %33 : vector<1x192xf32> to vector<192xf32>
    %35 = vector.shape_cast %34 : vector<192xf32> to vector<1x192xf32>
    %36 = vector.broadcast %35 : vector<1x192xf32> to vector<64x192xf32>
    %37 = arith.addf %32, %36 : vector<64x192xf32>
    %cst_15 = arith.constant 0.000000e+00 : f32
    %38 = vector.broadcast %cst_15 : f32 to vector<64x64xf32>
    %39 = vector.extract_strided_slice %37 {offsets = [0, 0], sizes = [64, 16], strides = [1, 1]} : vector<64x192xf32> to vector<64x16xf32>
    %cst_16 = arith.constant 2.500000e-01 : f32
    %40 = vector.broadcast %cst_16 : f32 to vector<64x16xf32>
    %41 = arith.mulf %39, %40 : vector<64x16xf32>
    %42 = vector.shape_cast %41 : vector<64x16xf32> to vector<4x16x16xf32>
    %43 = arith.truncf %42 : vector<4x16x16xf32> to vector<4x16x16xbf16>
    %44 = vector.extract_strided_slice %37 {offsets = [0, 64], sizes = [64, 16], strides = [1, 1]} : vector<64x192xf32> to vector<64x16xf32>
    %45 = vector.shape_cast %44 : vector<64x16xf32> to vector<4x16x16xf32>
    %46 = arith.truncf %45 : vector<4x16x16xf32> to vector<4x16x16xbf16>
    %47 = vector.extract_strided_slice %37 {offsets = [0, 128], sizes = [64, 16], strides = [1, 1]} : vector<64x192xf32> to vector<64x16xf32>
    %48 = vector.shape_cast %47 : vector<64x16xf32> to vector<4x16x16xf32>
    %49 = arith.truncf %48 : vector<4x16x16xf32> to vector<4x16x16xbf16>
    %cst_17 = arith.constant dense<0.000000e+00> : vector<4x16x16xf32>
    %50 = tpu.matmul %43, %46, %cst_17 {dimension_numbers = #tpu.dot_dimension_numbers<[2], [2], [1], [1], [0, 0, 0, 1, 1, 1], [0], [0]>} : vector<4x16x16xbf16>, vector<4x16x16xbf16>, vector<4x16x16xf32> -> vector<4x16x16xf32>
    %c0_18 = arith.constant 0 : index
    %c0_19 = arith.constant 0 : index
    %c0_20 = arith.constant 0 : index
    %51 = vector.load %arg6[%c0_18, %c0_19, %c0_20] : memref<4x16x16xf32, #tpu.memory_space<vmem>>, vector<1x16x16xf32>
    %52 = vector.shape_cast %51 : vector<1x16x16xf32> to vector<16x16xf32>
    %53 = vector.shape_cast %52 : vector<16x16xf32> to vector<1x16x16xf32>
    %54 = vector.broadcast %53 : vector<1x16x16xf32> to vector<4x16x16xf32>
    %55 = arith.addf %50, %54 : vector<4x16x16xf32>
    %cst_21 = arith.constant dense<0xFF800000> : vector<4x16xf32>
    %56 = vector.multi_reduction <maximumf>, %55, %cst_21 [2] : vector<4x16x16xf32> to vector<4x16xf32>
    %57 = vector.shape_cast %56 : vector<4x16xf32> to vector<4x16x1xf32>
    %58 = vector.broadcast %57 : vector<4x16x1xf32> to vector<4x16x16xf32>
    %59 = arith.subf %55, %58 : vector<4x16x16xf32>
    %60 = math.exp %59 : vector<4x16x16xf32>
    %cst_22 = arith.constant dense<0.000000e+00> : vector<4x16xf32>
    %61 = vector.multi_reduction <add>, %60, %cst_22 [2] : vector<4x16x16xf32> to vector<4x16xf32>
    %62 = vector.shape_cast %61 : vector<4x16xf32> to vector<4x16x1xf32>
    %63 = tpu.reciprocal %62 {approx = true} : vector<4x16x1xf32> -> vector<4x16x1xf32>
    %64 = vector.broadcast %63 : vector<4x16x1xf32> to vector<4x16x16xf32>
    %65 = arith.mulf %60, %64 : vector<4x16x16xf32>
    %66 = arith.truncf %65 : vector<4x16x16xf32> to vector<4x16x16xbf16>
    %cst_23 = arith.constant dense<0.000000e+00> : vector<4x16x16xf32>
    %67 = tpu.matmul %66, %49, %cst_23 {dimension_numbers = #tpu.dot_dimension_numbers<[2], [1], [1], [2], [0, 0, 0, 1, 1, 2], [0], [0]>} : vector<4x16x16xbf16>, vector<4x16x16xbf16>, vector<4x16x16xf32> -> vector<4x16x16xf32>
    %68 = vector.shape_cast %67 : vector<4x16x16xf32> to vector<64x16xf32>
    %69 = arith.truncf %68 : vector<64x16xf32> to vector<64x16xbf16>
    %c0_24 = arith.constant 0 : index
    %c0_25 = arith.constant 0 : index
    %c0_26 = arith.constant 0 : index
    %70 = vector.load %arg7[%c0_24, %c0_25, %c0_26] : memref<4x16x64xbf16, #tpu.memory_space<vmem>>, vector<1x16x64xbf16>
    %71 = vector.shape_cast %70 : vector<1x16x64xbf16> to vector<16x64xbf16>
    %cst_27 = arith.constant dense<0.000000e+00> : vector<64x64xf32>
    %72 = tpu.matmul %69, %71, %cst_27 {dimension_numbers = #tpu.dot_dimension_numbers<[1], [0], [0], [1], [0, 0, 1, 1], [], []>} : vector<64x16xbf16>, vector<16x64xbf16>, vector<64x64xf32> -> vector<64x64xf32>
    %73 = arith.addf %38, %72 : vector<64x64xf32>
    %74 = vector.extract_strided_slice %37 {offsets = [0, 16], sizes = [64, 16], strides = [1, 1]} : vector<64x192xf32> to vector<64x16xf32>
    %cst_28 = arith.constant 2.500000e-01 : f32
    %75 = vector.broadcast %cst_28 : f32 to vector<64x16xf32>
    %76 = arith.mulf %74, %75 : vector<64x16xf32>
    %77 = vector.shape_cast %76 : vector<64x16xf32> to vector<4x16x16xf32>
    %78 = arith.truncf %77 : vector<4x16x16xf32> to vector<4x16x16xbf16>
    %79 = vector.extract_strided_slice %37 {offsets = [0, 80], sizes = [64, 16], strides = [1, 1]} : vector<64x192xf32> to vector<64x16xf32>
    %80 = vector.shape_cast %79 : vector<64x16xf32> to vector<4x16x16xf32>
    %81 = arith.truncf %80 : vector<4x16x16xf32> to vector<4x16x16xbf16>
    %82 = vector.extract_strided_slice %37 {offsets = [0, 144], sizes = [64, 16], strides = [1, 1]} : vector<64x192xf32> to vector<64x16xf32>
    %83 = vector.shape_cast %82 : vector<64x16xf32> to vector<4x16x16xf32>
    %84 = arith.truncf %83 : vector<4x16x16xf32> to vector<4x16x16xbf16>
    %cst_29 = arith.constant dense<0.000000e+00> : vector<4x16x16xf32>
    %85 = tpu.matmul %78, %81, %cst_29 {dimension_numbers = #tpu.dot_dimension_numbers<[2], [2], [1], [1], [0, 0, 0, 1, 1, 1], [0], [0]>} : vector<4x16x16xbf16>, vector<4x16x16xbf16>, vector<4x16x16xf32> -> vector<4x16x16xf32>
    %c1 = arith.constant 1 : index
    %c0_30 = arith.constant 0 : index
    %c0_31 = arith.constant 0 : index
    %86 = vector.load %arg6[%c1, %c0_30, %c0_31] : memref<4x16x16xf32, #tpu.memory_space<vmem>>, vector<1x16x16xf32>
    %87 = vector.shape_cast %86 : vector<1x16x16xf32> to vector<16x16xf32>
    %88 = vector.shape_cast %87 : vector<16x16xf32> to vector<1x16x16xf32>
    %89 = vector.broadcast %88 : vector<1x16x16xf32> to vector<4x16x16xf32>
    %90 = arith.addf %85, %89 : vector<4x16x16xf32>
    %cst_32 = arith.constant dense<0xFF800000> : vector<4x16xf32>
    %91 = vector.multi_reduction <maximumf>, %90, %cst_32 [2] : vector<4x16x16xf32> to vector<4x16xf32>
    %92 = vector.shape_cast %91 : vector<4x16xf32> to vector<4x16x1xf32>
    %93 = vector.broadcast %92 : vector<4x16x1xf32> to vector<4x16x16xf32>
    %94 = arith.subf %90, %93 : vector<4x16x16xf32>
    %95 = math.exp %94 : vector<4x16x16xf32>
    %cst_33 = arith.constant dense<0.000000e+00> : vector<4x16xf32>
    %96 = vector.multi_reduction <add>, %95, %cst_33 [2] : vector<4x16x16xf32> to vector<4x16xf32>
    %97 = vector.shape_cast %96 : vector<4x16xf32> to vector<4x16x1xf32>
    %98 = tpu.reciprocal %97 {approx = true} : vector<4x16x1xf32> -> vector<4x16x1xf32>
    %99 = vector.broadcast %98 : vector<4x16x1xf32> to vector<4x16x16xf32>
    %100 = arith.mulf %95, %99 : vector<4x16x16xf32>
    %101 = arith.truncf %100 : vector<4x16x16xf32> to vector<4x16x16xbf16>
    %cst_34 = arith.constant dense<0.000000e+00> : vector<4x16x16xf32>
    %102 = tpu.matmul %101, %84, %cst_34 {dimension_numbers = #tpu.dot_dimension_numbers<[2], [1], [1], [2], [0, 0, 0, 1, 1, 2], [0], [0]>} : vector<4x16x16xbf16>, vector<4x16x16xbf16>, vector<4x16x16xf32> -> vector<4x16x16xf32>
    %103 = vector.shape_cast %102 : vector<4x16x16xf32> to vector<64x16xf32>
    %104 = arith.truncf %103 : vector<64x16xf32> to vector<64x16xbf16>
    %c1_35 = arith.constant 1 : index
    %c0_36 = arith.constant 0 : index
    %c0_37 = arith.constant 0 : index
    %105 = vector.load %arg7[%c1_35, %c0_36, %c0_37] : memref<4x16x64xbf16, #tpu.memory_space<vmem>>, vector<1x16x64xbf16>
    %106 = vector.shape_cast %105 : vector<1x16x64xbf16> to vector<16x64xbf16>
    %cst_38 = arith.constant dense<0.000000e+00> : vector<64x64xf32>
    %107 = tpu.matmul %104, %106, %cst_38 {dimension_numbers = #tpu.dot_dimension_numbers<[1], [0], [0], [1], [0, 0, 1, 1], [], []>} : vector<64x16xbf16>, vector<16x64xbf16>, vector<64x64xf32> -> vector<64x64xf32>
    %108 = arith.addf %73, %107 : vector<64x64xf32>
    %109 = vector.extract_strided_slice %37 {offsets = [0, 32], sizes = [64, 16], strides = [1, 1]} : vector<64x192xf32> to vector<64x16xf32>
    %cst_39 = arith.constant 2.500000e-01 : f32
    %110 = vector.broadcast %cst_39 : f32 to vector<64x16xf32>
    %111 = arith.mulf %109, %110 : vector<64x16xf32>
    %112 = vector.shape_cast %111 : vector<64x16xf32> to vector<4x16x16xf32>
    %113 = arith.truncf %112 : vector<4x16x16xf32> to vector<4x16x16xbf16>
    %114 = vector.extract_strided_slice %37 {offsets = [0, 96], sizes = [64, 16], strides = [1, 1]} : vector<64x192xf32> to vector<64x16xf32>
    %115 = vector.shape_cast %114 : vector<64x16xf32> to vector<4x16x16xf32>
    %116 = arith.truncf %115 : vector<4x16x16xf32> to vector<4x16x16xbf16>
    %117 = vector.extract_strided_slice %37 {offsets = [0, 160], sizes = [64, 16], strides = [1, 1]} : vector<64x192xf32> to vector<64x16xf32>
    %118 = vector.shape_cast %117 : vector<64x16xf32> to vector<4x16x16xf32>
    %119 = arith.truncf %118 : vector<4x16x16xf32> to vector<4x16x16xbf16>
    %cst_40 = arith.constant dense<0.000000e+00> : vector<4x16x16xf32>
    %120 = tpu.matmul %113, %116, %cst_40 {dimension_numbers = #tpu.dot_dimension_numbers<[2], [2], [1], [1], [0, 0, 0, 1, 1, 1], [0], [0]>} : vector<4x16x16xbf16>, vector<4x16x16xbf16>, vector<4x16x16xf32> -> vector<4x16x16xf32>
    %c2 = arith.constant 2 : index
    %c0_41 = arith.constant 0 : index
    %c0_42 = arith.constant 0 : index
    %121 = vector.load %arg6[%c2, %c0_41, %c0_42] : memref<4x16x16xf32, #tpu.memory_space<vmem>>, vector<1x16x16xf32>
    %122 = vector.shape_cast %121 : vector<1x16x16xf32> to vector<16x16xf32>
    %123 = vector.shape_cast %122 : vector<16x16xf32> to vector<1x16x16xf32>
    %124 = vector.broadcast %123 : vector<1x16x16xf32> to vector<4x16x16xf32>
    %125 = arith.addf %120, %124 : vector<4x16x16xf32>
    %cst_43 = arith.constant dense<0xFF800000> : vector<4x16xf32>
    %126 = vector.multi_reduction <maximumf>, %125, %cst_43 [2] : vector<4x16x16xf32> to vector<4x16xf32>
    %127 = vector.shape_cast %126 : vector<4x16xf32> to vector<4x16x1xf32>
    %128 = vector.broadcast %127 : vector<4x16x1xf32> to vector<4x16x16xf32>
    %129 = arith.subf %125, %128 : vector<4x16x16xf32>
    %130 = math.exp %129 : vector<4x16x16xf32>
    %cst_44 = arith.constant dense<0.000000e+00> : vector<4x16xf32>
    %131 = vector.multi_reduction <add>, %130, %cst_44 [2] : vector<4x16x16xf32> to vector<4x16xf32>
    %132 = vector.shape_cast %131 : vector<4x16xf32> to vector<4x16x1xf32>
    %133 = tpu.reciprocal %132 {approx = true} : vector<4x16x1xf32> -> vector<4x16x1xf32>
    %134 = vector.broadcast %133 : vector<4x16x1xf32> to vector<4x16x16xf32>
    %135 = arith.mulf %130, %134 : vector<4x16x16xf32>
    %136 = arith.truncf %135 : vector<4x16x16xf32> to vector<4x16x16xbf16>
    %cst_45 = arith.constant dense<0.000000e+00> : vector<4x16x16xf32>
    %137 = tpu.matmul %136, %119, %cst_45 {dimension_numbers = #tpu.dot_dimension_numbers<[2], [1], [1], [2], [0, 0, 0, 1, 1, 2], [0], [0]>} : vector<4x16x16xbf16>, vector<4x16x16xbf16>, vector<4x16x16xf32> -> vector<4x16x16xf32>
    %138 = vector.shape_cast %137 : vector<4x16x16xf32> to vector<64x16xf32>
    %139 = arith.truncf %138 : vector<64x16xf32> to vector<64x16xbf16>
    %c2_46 = arith.constant 2 : index
    %c0_47 = arith.constant 0 : index
    %c0_48 = arith.constant 0 : index
    %140 = vector.load %arg7[%c2_46, %c0_47, %c0_48] : memref<4x16x64xbf16, #tpu.memory_space<vmem>>, vector<1x16x64xbf16>
    %141 = vector.shape_cast %140 : vector<1x16x64xbf16> to vector<16x64xbf16>
    %cst_49 = arith.constant dense<0.000000e+00> : vector<64x64xf32>
    %142 = tpu.matmul %139, %141, %cst_49 {dimension_numbers = #tpu.dot_dimension_numbers<[1], [0], [0], [1], [0, 0, 1, 1], [], []>} : vector<64x16xbf16>, vector<16x64xbf16>, vector<64x64xf32> -> vector<64x64xf32>
    %143 = arith.addf %108, %142 : vector<64x64xf32>
    %144 = vector.extract_strided_slice %37 {offsets = [0, 48], sizes = [64, 16], strides = [1, 1]} : vector<64x192xf32> to vector<64x16xf32>
    %cst_50 = arith.constant 2.500000e-01 : f32
    %145 = vector.broadcast %cst_50 : f32 to vector<64x16xf32>
    %146 = arith.mulf %144, %145 : vector<64x16xf32>
    %147 = vector.shape_cast %146 : vector<64x16xf32> to vector<4x16x16xf32>
    %148 = arith.truncf %147 : vector<4x16x16xf32> to vector<4x16x16xbf16>
    %149 = vector.extract_strided_slice %37 {offsets = [0, 112], sizes = [64, 16], strides = [1, 1]} : vector<64x192xf32> to vector<64x16xf32>
    %150 = vector.shape_cast %149 : vector<64x16xf32> to vector<4x16x16xf32>
    %151 = arith.truncf %150 : vector<4x16x16xf32> to vector<4x16x16xbf16>
    %152 = vector.extract_strided_slice %37 {offsets = [0, 176], sizes = [64, 16], strides = [1, 1]} : vector<64x192xf32> to vector<64x16xf32>
    %153 = vector.shape_cast %152 : vector<64x16xf32> to vector<4x16x16xf32>
    %154 = arith.truncf %153 : vector<4x16x16xf32> to vector<4x16x16xbf16>
    %cst_51 = arith.constant dense<0.000000e+00> : vector<4x16x16xf32>
    %155 = tpu.matmul %148, %151, %cst_51 {dimension_numbers = #tpu.dot_dimension_numbers<[2], [2], [1], [1], [0, 0, 0, 1, 1, 1], [0], [0]>} : vector<4x16x16xbf16>, vector<4x16x16xbf16>, vector<4x16x16xf32> -> vector<4x16x16xf32>
    %c3 = arith.constant 3 : index
    %c0_52 = arith.constant 0 : index
    %c0_53 = arith.constant 0 : index
    %156 = vector.load %arg6[%c3, %c0_52, %c0_53] : memref<4x16x16xf32, #tpu.memory_space<vmem>>, vector<1x16x16xf32>
    %157 = vector.shape_cast %156 : vector<1x16x16xf32> to vector<16x16xf32>
    %158 = vector.shape_cast %157 : vector<16x16xf32> to vector<1x16x16xf32>
    %159 = vector.broadcast %158 : vector<1x16x16xf32> to vector<4x16x16xf32>
    %160 = arith.addf %155, %159 : vector<4x16x16xf32>
    %cst_54 = arith.constant dense<0xFF800000> : vector<4x16xf32>
    %161 = vector.multi_reduction <maximumf>, %160, %cst_54 [2] : vector<4x16x16xf32> to vector<4x16xf32>
    %162 = vector.shape_cast %161 : vector<4x16xf32> to vector<4x16x1xf32>
    %163 = vector.broadcast %162 : vector<4x16x1xf32> to vector<4x16x16xf32>
    %164 = arith.subf %160, %163 : vector<4x16x16xf32>
    %165 = math.exp %164 : vector<4x16x16xf32>
    %cst_55 = arith.constant dense<0.000000e+00> : vector<4x16xf32>
    %166 = vector.multi_reduction <add>, %165, %cst_55 [2] : vector<4x16x16xf32> to vector<4x16xf32>
    %167 = vector.shape_cast %166 : vector<4x16xf32> to vector<4x16x1xf32>
    %168 = tpu.reciprocal %167 {approx = true} : vector<4x16x1xf32> -> vector<4x16x1xf32>
    %169 = vector.broadcast %168 : vector<4x16x1xf32> to vector<4x16x16xf32>
    %170 = arith.mulf %165, %169 : vector<4x16x16xf32>
    %171 = arith.truncf %170 : vector<4x16x16xf32> to vector<4x16x16xbf16>
    %cst_56 = arith.constant dense<0.000000e+00> : vector<4x16x16xf32>
    %172 = tpu.matmul %171, %154, %cst_56 {dimension_numbers = #tpu.dot_dimension_numbers<[2], [1], [1], [2], [0, 0, 0, 1, 1, 2], [0], [0]>} : vector<4x16x16xbf16>, vector<4x16x16xbf16>, vector<4x16x16xf32> -> vector<4x16x16xf32>
    %173 = vector.shape_cast %172 : vector<4x16x16xf32> to vector<64x16xf32>
    %174 = arith.truncf %173 : vector<64x16xf32> to vector<64x16xbf16>
    %c3_57 = arith.constant 3 : index
    %c0_58 = arith.constant 0 : index
    %c0_59 = arith.constant 0 : index
    %175 = vector.load %arg7[%c3_57, %c0_58, %c0_59] : memref<4x16x64xbf16, #tpu.memory_space<vmem>>, vector<1x16x64xbf16>
    %176 = vector.shape_cast %175 : vector<1x16x64xbf16> to vector<16x64xbf16>
    %cst_60 = arith.constant dense<0.000000e+00> : vector<64x64xf32>
    %177 = tpu.matmul %174, %176, %cst_60 {dimension_numbers = #tpu.dot_dimension_numbers<[1], [0], [0], [1], [0, 0, 1, 1], [], []>} : vector<64x16xbf16>, vector<16x64xbf16>, vector<64x64xf32> -> vector<64x64xf32>
    %178 = arith.addf %143, %177 : vector<64x64xf32>
    %c0_61 = arith.constant 0 : index
    %c0_62 = arith.constant 0 : index
    %179 = vector.load %arg8[%c0_61, %c0_62] : memref<1x64xf32, #tpu.memory_space<vmem>>, vector<1x64xf32>
    %180 = vector.shape_cast %179 : vector<1x64xf32> to vector<64xf32>
    %181 = vector.shape_cast %180 : vector<64xf32> to vector<1x64xf32>
    %182 = vector.broadcast %181 : vector<1x64xf32> to vector<64x64xf32>
    %183 = arith.addf %178, %182 : vector<64x64xf32>
    %184 = vector.shape_cast %183 : vector<64x64xf32> to vector<4x16x64xf32>
    %c0_63 = arith.constant 0 : index
    %c0_64 = arith.constant 0 : index
    %c0_65 = arith.constant 0 : index
    %185 = vector.load %arg9[%c0_63, %c0_64, %c0_65] : memref<4x16x64xf32, #tpu.memory_space<vmem>>, vector<4x16x64xf32>
    tpu.vector_store %arg9[%c0_63, %c0_64, %c0_65], %184 {strides = array<i32>} : memref<4x16x64xf32, #tpu.memory_space<vmem>>, vector<4x16x64xf32>,
    return
  }
  func.func @transform_0(%arg0: i32) -> (i32, i32, i32) {
    %c0_i32 = arith.constant 0 : i32
    %c0_i32_0 = arith.constant 0 : i32
    %c0_i32_1 = arith.constant 0 : i32
    return %arg0, %c0_i32, %c0_i32_0 : i32, i32, i32
  }
  func.func @transform_1(%arg0: i32) -> (i32, i32) {
    %c0_i32 = arith.constant 0 : i32
    %c0_i32_0 = arith.constant 0 : i32
    %c0_i32_1 = arith.constant 0 : i32
    return %c0_i32, %c0_i32_0 : i32, i32
  }
  func.func @transform_2(%arg0: i32) -> (i32, i32) {
    %c0_i32 = arith.constant 0 : i32
    %c0_i32_0 = arith.constant 0 : i32
    %c0_i32_1 = arith.constant 0 : i32
    return %c0_i32, %c0_i32_0 : i32, i32
  }
  func.func @transform_3(%arg0: i32) -> (i32, i32) {
    %c0_i32 = arith.constant 0 : i32
    %c0_i32_0 = arith.constant 0 : i32
    %c0_i32_1 = arith.constant 0 : i32
    return %c0_i32, %c0_i32_0 : i32, i32
  }
  func.func @transform_4(%arg0: i32) -> (i32, i32) {
    %c0_i32 = arith.constant 0 : i32
    %c0_i32_0 = arith.constant 0 : i32
    %c0_i32_1 = arith.constant 0 : i32
    return %c0_i32, %c0_i32_0 : i32, i32
  }
  func.func @transform_5(%arg0: i32) -> (i32, i32, i32) {
    %c0_i32 = arith.constant 0 : i32
    %c0_i32_0 = arith.constant 0 : i32
    %c0_i32_1 = arith.constant 0 : i32
    %c0_i32_2 = arith.constant 0 : i32
    return %c0_i32, %c0_i32_0, %c0_i32_1 : i32, i32, i32
  }
  func.func @transform_6(%arg0: i32) -> (i32, i32, i32) {
    %c0_i32 = arith.constant 0 : i32
    %c0_i32_0 = arith.constant 0 : i32
    %c0_i32_1 = arith.constant 0 : i32
    %c0_i32_2 = arith.constant 0 : i32
    return %c0_i32, %c0_i32_0, %c0_i32_1 : i32, i32, i32
  }
  func.func @transform_7(%arg0: i32) -> (i32, i32) {
    %c0_i32 = arith.constant 0 : i32
    %c0_i32_0 = arith.constant 0 : i32
    %c0_i32_1 = arith.constant 0 : i32
    return %c0_i32, %c0_i32_0 : i32, i32
  }
  func.func @transform_8(%arg0: i32) -> (i32, i32, i32) {
    %c0_i32 = arith.constant 0 : i32
    %c0_i32_0 = arith.constant 0 : i32
    %c0_i32_1 = arith.constant 0 : i32
    return %arg0, %c0_i32, %c0_i32_0 : i32, i32, i32
  }
}

</mosaic_0001>

<bundles_post_ra>
// kernel: tpu_custom_call.1
= control target key start
LH: loop header
LB: loop body
LE: loop exit
PB: predicated region body
PF: predicated region fallthrough
CT: control target
= control target key end

     0   :  { %s4921_s0 = inlined_call_operand.hbm [shape: f32[8,16,64], index: 0, kind: input, shape index: {}]   ;;  %s4922_s1 = inlined_call_operand.vmem [shape: f32[1,64], index: 1, kind: input, shape index: {}]   ;;  %s4923_s2 = inlined_call_operand.hbm [shape: f32[1,64], index: 2, kind: input, shape index: {}]   ;;  %s4924_s3 = inlined_call_operand.hbm [shape: bf16[64,192], index: 3, kind: input, shape index: {}]   ;;  %s4925_s4 = inlined_call_operand.vmem [shape: f32[1,192], index: 4, kind: input, shape index: {}]   ;;  %s4926_s5 = inlined_call_operand.hbm [shape: f32[4,16,16], index: 5, kind: input, shape index: {}]   ;;  %s4927_s6 = inlined_call_operand.hbm [shape: bf16[4,16,64], index: 6, kind: input, shape index: {}]   ;;  %s4928_s7 = inlined_call_operand.vmem [shape: f32[1,64], index: 7, kind: input, shape index: {}]   ;;  %s4929_s8 = inlined_call_operand.hbm [shape: f32[8,16,64], index: 8, kind: output, shape index: {}]  }
   0x1   :  { %4936 = sst [smem:[#allocation16_spill]] %s4923_s2 }
   0x2   :  { %4937 = sst [smem:[#allocation17_spill]] %s4924_s3 }
   0x3   :  { %13 = vsyncpa [#allocation3], 0 }
   0x4   :  { %15 = vsyncpa [#allocation3 + $0x1], 0 }
   0x5   :  { %16 = vsyncpa [#allocation6], 0 }
   0x6   :  { %17 = vsyncpa [#allocation9], 0 }
   0x7   :  { %18 = vsyncpa [#allocation4], 0 }
   0x8   :  { %20 = vsyncpa [#allocation4 + $0x1], 0  ;;  %s4108_s27 = smov 0   ;;  %s4110_s28 = smov 0  }
   0x9   :  { %s4112_s29 = smov 0   ;;  %s4114_s30 = smov 0  }
   0xa LB: > { %s4129_s9 = sadd.s32 4294967295, %s4039_s30   ;;  %s3161_s10 = sadd.s32 4294967294, %s4039_s30   ;;  %s4039_s30 = sphi %s4114_s30, %s4960_s30   ;;  %s4035_s29 = sphi %s4112_s29, %s4959_s29   ;;  %s4031_s28 = sphi %s4110_s28, %s4958_s28   ;;  %s4027_s27 = sphi %s4108_s27, %s4957_s27  }
   0xb   : > { %p46_p0 = scmp.ne.s32.totalorder %s4031_s28, %s4027_s27  ;;  %p4930_p1 = scmp.eq.s32.totalorder %s4129_s9, 0 }
   0xc   : > { %p217_p2 = scmp.eq.s32.totalorder %s4129_s9, 1  ;;  %p223_p3 = scmp.eq.s32.totalorder %s3161_s10, 1 }
   0xd   : > { %p4138_p4 = por %p4930_p1, %p46_p0  ;;  %p3162_p5 = scmp.ge.s32.totalorder %s4039_s30, 1 }
   0xe   : > { %p4143_p6 = por %p223_p3, %p46_p0  ;;  %p230_p7 = scmp.lt.s32.totalorder %s4039_s30, 3 }
   0xf   : > { %s4938_s11 = scalar_select %p4138_p4, 1, 0 }
  0x10   : > { %s4939_s12 = scalar_select %p4143_p6, 1, 0 }
  0x11   : > { %p4148_p8 = pnand %p3162_p5, %p230_p7  ;;  %s4041_s14 = smov [#allocation5]  }
  0x12   : > { %s246_s15 = sshll.u32 %s4041_s14, 4  ;;  %s4042_s17 = smov [#allocation8]   ;;  %s247_s15 = int_to_ptr.vmem [resolvable:$true] %s246_s15 }
  0x13   : > { %s4940_s13 = scalar_select %p4148_p8, 1, 0 }
  0x14   : > { %p3592_p10 = pneg %p4148_p8  ;;  %s272_s18 = sshll.u32 %s4042_s17, 4  ;;  %s4161_s18 = int_to_ptr.vmem [resolvable:$true] %s272_s18 }
  0x15   : > { %s4043_s19 = smov [#allocation7]   ;;  %s3846_s21 = scalar_lea.vmem %s247_s15, 16 }
  0x16   : > { %p4157_p11 = pnand %p3592_p10, %p4930_p1  ;;  %s256_s20 = sshll.u32 %s4043_s19, 4  ;;  %s257_s20 = int_to_ptr.vmem [resolvable:$true] %s256_s20 }
  0x17   : > { %p3847_p13 = scmp.ne.s32.totalorder %s247_s15, %s3846_s21  ;;  %s3853_s22 = scalar_lea.vmem %s247_s15, 32 }
  0x18   : > { %p3837_p12 = pneg %p4157_p11  ;;  %p3854_p5 = scmp.lt.s32.totalorder %s247_s15, %s247_s15 }
  0x19   : > { %p3855_p7 = scmp.lt.s32.totalorder %s3853_s22, %s3846_s21 }
  0x1a   : > { %p3849_p0 = pnand %p3847_p13, %p3837_p12 }
  0x1b   : > { %p3856_p10 = por %p3855_p7, %p3854_p5 }
  0x1c   : > { %p3850_p3 = pneg %p3849_p0 }
  0x1e   : > { %p3857_p9 = pnand %p3856_p10, %p3850_p3 }
  0x20   : > { %3860 = shalt.err (!%p3857_p9)
}
  0x21   : > { %s4942_s2 = sld [smem:[#allocation16_spill]]  ;;  %s3872_s25 = scalar_lea.vmem %s4161_s18, 1024 }
  0x22   : > { %p3873_p1 = scmp.ne.s32.totalorder %s4161_s18, %s3872_s25  ;;  %p3880_p5 = scmp.lt.s32.totalorder %s4161_s18, %s4161_s18 }
  0x23   : > { %p3881_p3 = scmp.lt.s32.totalorder %s3872_s25, %s3872_s25 }
  0x24   : > { %p3875_p13 = pnand %p3873_p1, %p3837_p12 }
  0x25   : > { %p3882_p9 = por %p3881_p3, %p3880_p5 }
  0x26   : > { %p3876_p0 = pneg %p3875_p13 }
  0x27   : > { %3595 = dma.hbm_to_vmem [thread:$0]  (!%p4157_p11), %s4942_s2, 16, %s247_s15, [#allocation6]  }
  0x28   : > { %p3883_p7 = pnand %p3882_p9, %p3876_p0 }
  0x2a   : > { %3886 = shalt.err (!%p3883_p7)
}
  0x2b   : > { %s4931_s26 = smov 128   ;;  %s4932_s10 = smov 8  }
  0x2c   : > { %3601 = dma.hbm_to_vmem [thread:$0]  (!%p4157_p11), %s4926_s5, 1024, %s4161_s18, [#allocation9], %s4931_s26, %s4931_s26, %s4932_s10  }
  0x2d   : > { %s3898_s17 = scalar_lea.vmem %s257_s20, 1024  ;;  %p3906_p0 = scmp.lt.s32.totalorder %s257_s20, %s257_s20 }
  0x2e   : > { %p3899_p1 = scmp.ne.s32.totalorder %s257_s20, %s3898_s17  ;;  %p3907_p5 = scmp.lt.s32.totalorder %s3898_s17, %s3898_s17 }
  0x30   : > { %p3901_p10 = pnand %p3899_p1, %p3837_p12  ;;  %p3908_p3 = por %p3907_p5, %p3906_p0 }
  0x32   : > { %p3902_p13 = pneg %p3901_p10 }
  0x34   : > { %p3909_p9 = pnand %p3908_p3, %p3902_p13 }
  0x36   : > { %3912 = shalt.err (!%p3909_p9)
}
  0x37   : > { %s4943_s3 = sld [smem:[#allocation17_spill]]  ;;  %s4046_s18 = smov [#allocation10]  }
  0x38   : > { %s285_s22 = sshll.u32 %s4046_s18, 4  ;;  %s286_s22 = int_to_ptr.vmem [resolvable:$true] %s285_s22 }
  0x39   : > { %s3924_s23 = scalar_lea.vmem %s286_s22, 512  ;;  %p3932_p13 = scmp.lt.s32.totalorder %s286_s22, %s286_s22 }
  0x3a   : > { %p3925_p7 = scmp.ne.s32.totalorder %s286_s22, %s3924_s23  ;;  %p3933_p0 = scmp.lt.s32.totalorder %s3924_s23, %s3924_s23 }
  0x3c   : > { %p3927_p1 = pnand %p3925_p7, %p3837_p12  ;;  %p3934_p5 = por %p3933_p0, %p3932_p13 }
  0x3d   : > { %3598 = dma.hbm_to_vmem [thread:$0]  (!%p4157_p11), %s4943_s3, 1024, %s257_s20, [#allocation6], %s4931_s26, %s4931_s26, %s4932_s10  }
  0x3e   : > { %p3928_p10 = pneg %p3927_p1 }
  0x40   : > { %p3935_p3 = pnand %p3934_p5, %p3928_p10 }
  0x42   : > { %3938 = shalt.err (!%p3935_p3)
}
  0x43   : > { %s4047_s24 = smov 64   ;;  %s4048_s20 = smov 4  }
  0x44   : > { %3604 = dma.hbm_to_vmem [thread:$0]  (!%p4157_p11), %s4927_s6, 512, %s286_s22, [#allocation9], %s4047_s24, %s4047_s24, %s4048_s20  }
  0x45   : > { %s4209_s15 = sadd.s32 1, %s4039_s30   ;;  %s33_s19 = sadd.s32 1, %s4035_s29 }
  0x46   : > { %s30_s17 = ssub.s32 %s4039_s30, %s4209_s15  ;;  %p40_p9 = scmp.ne.s32.totalorder %s4035_s29, %s4031_s28 }
  0x47   : > { %p31_p12 = scmp.eq.s32.totalorder %s30_s17, 0  ;;  %p41_p7 = scmp.eq.s32.totalorder %s4039_s30, 0 }
  0x48   : > { %p4222_p10 = por %p217_p2, %p40_p9  ;;  %p3617_p13 = scmp.lt.s32.totalorder %s4039_s30, 2 }
  0x49   : > { %s4218_s21 = scalar_select %p31_p12, %s4035_s29, %s33_s19  }
  0x4a   : > { %p42_p1 = por %p41_p7, %p40_p9  ;;  %s302_s16 = sand.u32 1, %s4035_s29  }
  0x4b   : > { %s4944_s18 = scalar_select %p4222_p10, 1, 0 }
  0x4c   : > { %s3168_s23 = sshll.u32 %s302_s16, 6  ;;  %s3253_s22 = sshll.u32 %s4039_s30, 10 }
  0x4d   : > { %s4232_s25 = scalar_lea.hbm %s4921_s0, %s3253_s22  ;;  %s306_s14 = scalar_lea.vmem [#allocation2], %s3168_s23 }
  0x4e   : > { %s314_s17 = sshll.u32 %s306_s14, 4  ;;  %p4236_p2 = pnand %p3617_p13, %p42_p1  ;;  %s4234_s17 = int_to_ptr.vmem [resolvable:$true] %s314_s17 }
  0x4f   : > { %s4240_s26 = scalar_lea.sflag [#allocation3], %s302_s16  ;;  %s3939_s10 = scalar_lea.hbm %s4232_s25, 1024 }
  0x50   : > { %p3940_p11 = scmp.ne.s32.totalorder %s4232_s25, %s3939_s10  ;;  %p3941_p0 = pneg %p4236_p2 }
  0x51   : > { %s3944_s23 = scalar_lea.hbm %s4921_s0, 2048  ;;  %p3945_p12 = scmp.lt.s32.totalorder %s4232_s25, %s4921_s0 }
  0x52   : > { %p3942_p5 = pnand %p3941_p0, %p3940_p11  ;;  %p3946_p9 = scmp.lt.s32.totalorder %s3944_s23, %s3939_s10 }
  0x54   : > { %p3943_p3 = pneg %p3942_p5  ;;  %p3947_p7 = por %p3946_p9, %p3945_p12 }
  0x56   : > { %p3948_p1 = pnand %p3947_p7, %p3943_p3 }
  0x58   : > { %3951 = shalt.err (!%p3948_p1)
}
  0x59   : > { %s3952_s16 = scalar_lea.vmem %s4234_s17, 1024  ;;  %s4049_s2 = smov [#allocation2]  }
  0x5a   : > { %p3953_p13 = scmp.ne.s32.totalorder %s4234_s17, %s3952_s16  ;;  %s3957_s3 = sshll.u32 %s4049_s2, 4  ;;  %s3958_s3 = int_to_ptr.vmem [resolvable:$false] %s3957_s3 }
  0x5b   : > { %s3959_s22 = scalar_lea.vmem %s3958_s3, 2048  ;;  %p3960_p5 = scmp.lt.s32.totalorder %s4234_s17, %s3958_s3 }
  0x5c   : > { %p3955_p6 = pnand %p3953_p13, %p3941_p0  ;;  %p3961_p10 = scmp.lt.s32.totalorder %s3959_s22, %s3952_s16 }
  0x5e   : > { %p3956_p11 = pneg %p3955_p6  ;;  %p3962_p4 = por %p3961_p10, %p3960_p5 }
  0x60   : > { %p3963_p8 = pnand %p3962_p4, %p3956_p11 }
  0x62   : > { %3966 = shalt.err (!%p3963_p8)
}
  0x63   : > { %s4946_s10 = smov 8   ;;  %s4947_s24 = smov 128  }
  0x64   : > { %3608 = dma.hbm_to_vmem [thread:$0]  (!%p4236_p2), %s4232_s25, 1024, %s4234_s17, %s4240_s26, %s4947_s24, %s4947_s24, %s4946_s10  }
  0x65   : > { %p4948_p6 = scmp.ne.s32.totalorder %s4940_s13, 0 }
  0x66   : > { %s4267_s2 = sand.u32 (!%p4948_p6), 1, %s4031_s28   ;;  %p4949_p4 = scmp.ne.s32.totalorder (!%p4948_p6), %s4938_s11, 0 }
  0x67   : > { %326 = sbr.rel (%p4948_p6) target bundleno = 3915 (0xf4b), region = 52  ;;  %s3173_s3 = sshll.u32 (!%p4948_p6), %s4267_s2, 6 }
  0x68   : > { %s329_s23 = scalar_lea.sflag (!%p4948_p6), [#allocation3], %s4267_s2  ;;  %s332_s19 = scalar_lea.vmem (!%p4948_p6), [#allocation2], %s3173_s3 }
  0x6c   : > { %4010 = dma.done.wait (%p4949_p4), %s329_s23, 1024  }
  0x6d   : > { %4012 = vsyncadd (%p4949_p4), %s329_s23, 4294966272  ;;  %p4950_p8 = scmp.eq.s32.totalorder %s4129_s9, 0 }
  0x6f   : > { %4014 = dma.done.wait (%p4950_p8), [#allocation6], 1040   ;;  %p4951_p10 = pmov %p4950_p8 }
  0x70   : > { %p4952_p2 = pmov %p4950_p8 }
  0x71   : > { %4016 = vsyncadd (%p4951_p10), [#allocation6], 4294966256 }
  0x72   : > { %4018 = dma.done.wait (%p4952_p2), [#allocation9], 1536   ;;  %p4953_p0 = pmov %p4952_p2 }
  0x73   : > { %vm394_vm0 = vcmask 523264   ;;  %v384_v0 = vld [vmem:[%s332_s19] sm:$0xff]  ;;  %v386_v1 = vld [vmem:[%s332_s19 + $0x10] sm:$0xff]  ;;  %v385_v2 = vld [vmem:[%s332_s19 + $0x8] sm:$0xff]  ;;  %v4050_v63 = vmov 0   ;;  %vm4052_vm1 = vmmov 0  }
  0x74   : > { %4020 = vsyncadd (%p4953_p0), [#allocation9], 4294965760  ;;  %v395_v3 = vsel %vm394_vm0, %v384_v0, 0.0  ;;  %v401_v4 = vsel %vm394_vm0, %v386_v1, 0.0  ;;  %v387_v5 = vld [vmem:[%s332_s19 + $0x18] sm:$0xff]  ;;  %v388_v6 = vld [vmem:[%s332_s19 + $0x20] sm:$0xff]  ;;  %636 = vmatprep.mubr.bf16.mxu0 %v4050_v63 }
  0x75   : > { %396 = vadd.xlane.f32.xlu0 %v395_v3  ;;  %402 = vadd.xlane.f32.xlu1 %v401_v4  ;;  %v389_v7 = vld [vmem:[%s332_s19 + $0x28] sm:$0xff]  ;;  %v398_v8 = vsel %vm394_vm0, %v385_v2, 0.0  ;;  %v404_v9 = vsel %vm394_vm0, %v387_v5, 0.0  ;;  %v407_v10 = vsel %vm394_vm0, %v388_v6, 0.0  ;;  %v390_v12 = vld [vmem:[%s332_s19 + $0x30] sm:$0xff]  ;;  %v391_v13 = vld [vmem:[%s332_s19 + $0x38] sm:$0xff] }
  0x76   : > { %v410_v11 = vsel %vm394_vm0, %v389_v7, 0.0  ;;  %v413_v14 = vsel %vm394_vm0, %v390_v12, 0.0  ;;  %v416_v15 = vsel %vm394_vm0, %v391_v13, 0.0  ;;  %v3675_v56 = vld [vmem:[#allocation7 + $0x34] ss:$8 sps:$4 sm:$0xff]   ;;  %s4053_s17 = smov 64  }
  0x77   : > { %v3677_v57 = vld [vmem:[#allocation7 + $0x30] ss:$8 sps:$4 sm:$0xff]   ;;  %612 = vmatprep.subr.bf16.mxu0 %v3675_v56  ;;  %v3678_v58 = vld [vmem:[#allocation7 + $0x24] ss:$8 sps:$4 sm:$0xff]   ;;  %v3680_v59 = vld [vmem:[#allocation7 + $0x20] ss:$8 sps:$4 sm:$0xff]  }
  0x78   : > { %613 = vmatpush1.bf16.msra.mxu0 %v3677_v57  ;;  %v3681_v60 = vld [vmem:[#allocation7 + $0x14] ss:$8 sps:$4 sm:$0xff]   ;;  %v3683_v61 = vld [vmem:[#allocation7 + $0x10] ss:$8 sps:$4 sm:$0xff]   ;;  %v3684_v62 = vld [vmem:[#allocation7 + $0x4] ss:$8 sps:$4 sm:$0xff]  }
  0x79   : > { %399 = vadd.xlane.f32.xlu0 %v398_v8  ;;  %405 = vadd.xlane.f32.xlu1 %v404_v9  ;;  %vm702_vm2 = vcmask 130048   ;;  %s4054_s20 = smov 48   ;;  %s4055_s14 = smov 112  }
  0x7a   : > { %614 = vmatprep.subr.bf16.mxu0 %v3678_v58  ;;  %s4056_s16 = smov 32   ;;  %s4057_s22 = smov 96  }
  0x7b   : > { %s4058_s10 = smov 16   ;;  %s4059_s24 = smov 80  }
  0x7c   : > { %615 = vmatpush1.bf16.msra.mxu0 %v3680_v59  ;;  %s380_s11 = scalar_lea.vmem [#allocation11], %s3173_s3  ;;  %s3255_s3 = sshll.u32 %s4129_s9, 10 }
  0x7d   : > { %408 = vadd.xlane.f32.xlu0 %v407_v10  ;;  %411 = vadd.xlane.f32.xlu1 %v410_v11  ;;  %s3050_s13 = sshll.u32 %s380_s11, 4  ;;  %s3036_s9 = scalar_lea.sflag [#allocation4], %s4267_s2  ;;  %s4876_s13 = int_to_ptr.vmem [resolvable:$true] %s3050_s13 }
  0x7e   : > { %616 = vmatprep.subr.bf16.mxu0 %v3681_v60  ;;  %p4954_p12 = scmp.ne.s32.totalorder %s4944_s18, 0 }
  0x80   : > { %617 = vmatpush1.bf16.msra.mxu0 %v3683_v61 }
  0x81   : > { %414 = vadd.xlane.f32.xlu0 %v413_v14  ;;  %417 = vadd.xlane.f32.xlu1 %v416_v15 }
  0x82   : > { %618 = vmatprep.subr.bf16.mxu0 %v3684_v62 }
  0xfe   : > { %v397_v16 = vpop.xlane.xlu0 %396  ;;  %v403_v17 = vpop.xlane.xlu1 %402 }
  0xff   : > { %v420_v18 = vmul.f32 0.015625, %v397_v16  ;;  %v422_v19 = vmul.f32 0.015625, %v403_v17 }
 0x101   : > { %v4293_v20 = vsub.f32 %v384_v0, %v420_v18  ;;  %v4295_v21 = vsub.f32 %v386_v1, %v422_v19  ;;  %v3686_v0 = vld [vmem:[#allocation7] ss:$8 sps:$4 sm:$0xff]  }
 0x102   : > { %v400_v22 = vpop.xlane.xlu0 %399  ;;  %v406_v23 = vpop.xlane.xlu1 %405  ;;  %619 = vmatpush1.bf16.msra.mxu0 %v3686_v0 }
 0x103   : > { %v421_v24 = vmul.f32 0.015625, %v400_v22  ;;  %v423_v25 = vmul.f32 0.015625, %v406_v23  ;;  %v436_v26 = vmul.f32 %v4293_v20, %v4293_v20  ;;  %v438_v27 = vmul.f32 %v4295_v21, %v4295_v21 }
 0x105   : > { %v4301_v28 = vsub.f32 %v385_v2, %v421_v24  ;;  %v4303_v29 = vsub.f32 %v387_v5, %v423_v25  ;;  %v444_v30 = vsel %vm394_vm0, %v436_v26, 0.0  ;;  %v450_v33 = vsel %vm394_vm0, %v438_v27, 0.0  ;;  %v3179_v27 = vld [vmem:[%s4922_s1] ss:$0 sm:$0xff] }
 0x106   : > { %445 = vadd.xlane.f32.xlu0 %v444_v30  ;;  %v409_v31 = vpop.xlane.xlu0 %408  ;;  %v412_v32 = vpop.xlane.xlu1 %411 }
 0x107   : > { %v424_v34 = vmul.f32 0.015625, %v409_v31  ;;  %v425_v35 = vmul.f32 0.015625, %v412_v32  ;;  %v437_v36 = vmul.f32 %v4301_v28, %v4301_v28  ;;  %v439_v37 = vmul.f32 %v4303_v29, %v4303_v29 }
 0x109   : > { %v4311_v38 = vsub.f32 %v388_v6, %v424_v34  ;;  %v4313_v39 = vsub.f32 %v389_v7, %v425_v35  ;;  %v447_v40 = vsel %vm394_vm0, %v437_v36, 0.0  ;;  %v453_v43 = vsel %vm394_vm0, %v439_v37, 0.0  ;;  %v3180_v36 = vld [vmem:[#allocation5] ss:$0 sm:$0xff] }
 0x10a   : > { %451 = vadd.xlane.f32.xlu0 %v450_v33  ;;  %448 = vadd.xlane.f32.xlu1 %v447_v40  ;;  %v415_v41 = vpop.xlane.xlu0 %414  ;;  %v418_v42 = vpop.xlane.xlu1 %417 }
 0x10b   : > { %v426_v44 = vmul.f32 0.015625, %v415_v41  ;;  %v427_v45 = vmul.f32 0.015625, %v418_v42  ;;  %v440_v46 = vmul.f32 %v4311_v38, %v4311_v38  ;;  %v441_v47 = vmul.f32 %v4313_v39, %v4313_v39 }
 0x10d   : > { %v4321_v48 = vsub.f32 %v390_v12, %v426_v44  ;;  %v4323_v49 = vsub.f32 %v391_v13, %v427_v45  ;;  %v456_v50 = vsel %vm394_vm0, %v440_v46, 0.0  ;;  %v459_v51 = vsel %vm394_vm0, %v441_v47, 0.0 }
 0x10e   : > { %454 = vadd.xlane.f32.xlu1 %v453_v43  ;;  %457 = vadd.xlane.f32.xlu0 %v456_v50 }
 0x10f   : > { %v442_v52 = vmul.f32 %v4321_v48, %v4321_v48  ;;  %v443_v53 = vmul.f32 %v4323_v49, %v4323_v49 }
 0x111   : > { %v462_v54 = vsel %vm394_vm0, %v442_v52, 0.0  ;;  %v465_v55 = vsel %vm394_vm0, %v443_v53, 0.0 }
 0x112   : > { %460 = vadd.xlane.f32.xlu1 %v459_v51  ;;  %463 = vadd.xlane.f32.xlu0 %v462_v54 }
 0x116   : > { %466 = vadd.xlane.f32.xlu1 %v465_v55 }
 0x18f   : > { %v446_v1 = vpop.xlane.xlu0 %445 }
 0x190   : > { %v468_v2 = vmul.f32 0.015625, %v446_v1 }
 0x192   : > { %v476_v3 = vadd.f32 1e-05, %v468_v2  ;;  %v4051_v2 = vmov 0.0  }
 0x193   : > { %v449_v4 = vpop.xlane.xlu1 %448  ;;  %v452_v5 = vpop.xlane.xlu0 %451  ;;  %3370 = vmatprep.subr.bf16.mxu0 %v4051_v2  ;;  %3340 = vmatprep.subr.bf16.mxu1 %v4051_v2 }
 0x194   : > { %3691 = vrsqrt.f32 %v476_v3  ;;  %v469_v6 = vmul.f32 0.015625, %v449_v4  ;;  %v470_v7 = vmul.f32 0.015625, %v452_v5  ;;  %v540_v5 = vld [vmem:[%s4925_s4] sm:$0x3]  ;;  %3342 = vmatprep.mubr.msk.bf16.mxu1 %vm4052_vm1, %v4051_v2 }
 0x196   : > { %v477_v8 = vadd.f32 1e-05, %v469_v6  ;;  %v478_v9 = vadd.f32 1e-05, %v470_v7 }
 0x197   : > { %v455_v10 = vpop.xlane.xlu1 %454  ;;  %v458_v11 = vpop.xlane.xlu0 %457 }
 0x198   : > { %3693 = vrsqrt.f32 %v477_v8  ;;  %v471_v12 = vmul.f32 0.015625, %v455_v10  ;;  %v472_v14 = vmul.f32 0.015625, %v458_v11 }
 0x199   : > { %3695 = vrsqrt.f32 %v478_v9 }
 0x19a   : > { %v479_v13 = vadd.f32 1e-05, %v471_v12  ;;  %v480_v17 = vadd.f32 1e-05, %v472_v14 }
 0x19b   : > { %v461_v15 = vpop.xlane.xlu1 %460  ;;  %v464_v19 = vpop.xlane.xlu0 %463 }
 0x19c   : > { %3697 = vrsqrt.f32 %v479_v13  ;;  %v473_v16 = vmul.f32 0.015625, %v461_v15  ;;  %v474_v25 = vmul.f32 0.015625, %v464_v19 }
 0x19e   : > { %v481_v18 = vadd.f32 1e-05, %v473_v16  ;;  %v482_v32 = vadd.f32 1e-05, %v474_v25 }
 0x19f   : > { %v467_v22 = vpop.xlane.xlu1 %466 }
 0x1a0   : > { %3699 = vrsqrt.f32 %v481_v18  ;;  %v475_v23 = vmul.f32 0.015625, %v467_v22 }
 0x1a1   : > { %v3692_v24 = vpop.eup %3691  ;;  %3701 = vrsqrt.f32 %v480_v17 }
 0x1a2   : > { %v492_v26 = vmul.f32 %v3692_v24, %v4293_v20  ;;  %v483_v30 = vadd.f32 1e-05, %v475_v23 }
 0x1a4   : > { %v506_v34 = vmul.f32 %v3179_v27, %v492_v26  ;;  %3703 = vrsqrt.f32 %v483_v30 }
 0x1a5   : > { %v3694_v31 = vpop.eup %3693  ;;  %3705 = vrsqrt.f32 %v482_v32 }
 0x1a6   : > { %v493_v33 = vmul.f32 %v3694_v31, %v4301_v28  ;;  %v3696_v35 = vpop.eup %3695  ;;  %v520_v41 = vadd.f32 %v3180_v36, %v506_v34 }
 0x1a7   : > { %v494_v20 = vmul.f32 %v3696_v35, %v4295_v21 }
 0x1a8   : > { %v507_v37 = vmul.f32 %v3179_v27, %v493_v33 }
 0x1a9   : > { %v3698_v40 = vpop.eup %3697  ;;  %v508_v47 = vmul.f32 %v3179_v27, %v494_v20 }
 0x1aa   : > { %v521_v42 = vadd.f32 %v3180_v36, %v507_v37  ;;  %v495_v43 = vmul.f32 %v3698_v40, %v4303_v29 }
 0x1ab   : > { %v522_v52 = vadd.f32 %v3180_v36, %v508_v47 }
 0x1ac   : > { %v528_v44 = vpack.c.bf16 %v521_v42, %v520_v41  ;;  %v509_v45 = vmul.f32 %v3179_v27, %v495_v43 }
 0x1ad   : > { %v3700_v46 = vpop.eup %3699 }
 0x1ae   : > { %3189 = vmatmul.mubr.msk.bf16.vlgmr.msra.gmra.mxu0 %vm394_vm0, %v528_v44  ;;  %v3702_v28 = vpop.eup %3701  ;;  %v523_v50 = vadd.f32 %v3180_v36, %v509_v45  ;;  %v497_v51 = vmul.f32 %v3700_v46, %v4313_v39 }
 0x1af   : > { %646 = vmatprep.mubr.bf16.mxu0 %v4050_v63  ;;  %v496_v53 = vmul.f32 %v3702_v28, %v4311_v38 }
 0x1b0   : > { %v529_v54 = vpack.c.bf16 %v523_v50, %v522_v52  ;;  %v511_v55 = vmul.f32 %v3179_v27, %v497_v51 }
 0x1b1   : > { %v3704_v21 = vpop.eup %3703  ;;  %v510_v29 = vmul.f32 %v3179_v27, %v496_v53 }
 0x1b2   : > { %v3706_v56 = vpop.eup %3705  ;;  %v525_v57 = vadd.f32 %v3180_v36, %v511_v55  ;;  %v499_v58 = vmul.f32 %v3704_v21, %v4323_v49  ;;  %v542_v49 = vlaneseq }
 0x1b3   : > { %v524_v59 = vadd.f32 %v3180_v36, %v510_v29  ;;  %v498_v60 = vmul.f32 %v3706_v56, %v4321_v48 }
 0x1b4   : > { %v513_v39 = vmul.f32 %v3179_v27, %v499_v58  ;;  %v543_v3 = vshrl.u32 %v542_v49, 7 }
 0x1b5   : > { %v530_v61 = vpack.c.bf16 %v525_v57, %v524_v59  ;;  %v512_v38 = vmul.f32 %v3179_v27, %v498_v60 }
 0x1b6   : > { %3190 = vmatmul.mubr.msk.bf16.gmra.mxu0 %vm394_vm0, %v529_v54  ;;  %v527_v62 = vadd.f32 %v3180_v36, %v513_v39  ;;  %v544_v48 = vsub.s32 0, %v543_v3  ;;  %v548_v4 = vsub.s32 1, %v543_v3 }
 0x1b7   : > { %656 = vmatprep.mubr.bf16.mxu0 %v4050_v63  ;;  %v526_v0 = vadd.f32 %v3180_v36, %v512_v38 }
 0x1b8   : > { %v549_v6 = vrot.slane %v540_v5, %v548_v4 }
 0x1b9   : > { %v531_v1 = vpack.c.bf16 %v527_v62, %v526_v0 }
 0x1be   : > { %3191 = vmatmul.mubr.msk.bf16.gmra.mxu0 %vm394_vm0, %v530_v61 }
 0x1bf   : > { %666 = vmatprep.mubr.bf16.mxu0 %v4050_v63  ;;  %v545_v63 = vrot.slane %v540_v5, %v544_v48  ;;  %v697_v5 = vld [vmem:[#allocation8] sm:$0xff] }
 0x1c6   : > { %3192 = vmatmul.mubr.msk.bf16.gmra.mxu0 %vm394_vm0, %v531_v1 }
 0x1c7   : > { %3372 = vmatprep.mubr.msk.bf16.mxu0 %vm4052_vm1, %v4051_v2 }
 0x26e   : > { %v638_v7 = vpop.f32.mrf.mxu0 }
 0x26f   : > { %v639_v9 = vadd.f32 %v638_v7, %v545_v63 }
 0x270   : > { %v640_v8 = vpop.f32.mrf.mxu0 }
 0x271   : > { %v641_v10 = vadd.f32 %v640_v8, %v549_v6  ;;  %v677_v14 = vmul.f32 0.25, %v639_v9  ;;  %v698_v8 = vld [vmem:[#allocation8 + $0x8] sm:$0xff] }
 0x272   : > { %v642_v11 = vpop.f32.mrf.mxu0 }
 0x273   : > { %v643_v12 = vadd.f32 %v642_v11, %v545_v63 }
 0x274   : > { %v644_v13 = vpop.f32.mrf.mxu0 }
 0x275   : > { %v678_v15 = vmul.f32 0.25, %v643_v12  ;;  %v4361_v16 = vpack.c.bf16 %v643_v12, %v639_v9  ;;  %v645_v17 = vadd.f32 %v644_v13, %v549_v6 }
 0x276   : > { %v648_v18 = vpop.f32.mrf.mxu0 }
 0x277   : > { %v4363_v19 = vpack.c.bf16 %v678_v15, %v677_v14  ;;  %v4365_v22 = vpack.c.bf16 %v645_v17, %v641_v10  ;;  %700 = vrot.lane.b32.xlu0 %v4361_v16, %s4053_s17  ;;  %v649_v23 = vadd.f32 %v648_v18, %v545_v63 }
 0x278   : > { %v650_v24 = vpop.f32.mrf.mxu0 }
 0x279   : > { %v679_v27 = vmul.f32 0.25, %v649_v23  ;;  %v651_v31 = vadd.f32 %v650_v24, %v549_v6 }
 0x27a   : > { %v652_v25 = vpop.f32.mrf.mxu0 }
 0x27b   : > { %v653_v26 = vadd.f32 %v652_v25, %v545_v63 }
 0x27c   : > { %v654_v30 = vpop.f32.mrf.mxu0 }
 0x27d   : > { %v680_v32 = vmul.f32 0.25, %v653_v26  ;;  %v4369_v33 = vpack.c.bf16 %v653_v26, %v649_v23  ;;  %v655_v34 = vadd.f32 %v654_v30, %v549_v6 }
 0x27e   : > { %v658_v35 = vpop.f32.mrf.mxu0 }
 0x27f   : > { %v4371_v36 = vpack.c.bf16 %v680_v32, %v679_v27  ;;  %v4373_v37 = vpack.c.bf16 %v655_v34, %v651_v31  ;;  %751 = vrot.lane.b32.xlu1 %v4369_v33, %s4053_s17  ;;  %v659_v41 = vadd.f32 %v658_v35, %v545_v63 }
 0x280   : > { %v660_v40 = vpop.f32.mrf.mxu0 }
 0x281   : > { %v661_v42 = vadd.f32 %v660_v40, %v549_v6  ;;  %3371 = vmatpush3.bf16.msra.mxu0 %v4373_v37  ;;  %v681_v45 = vmul.f32 0.25, %v659_v41 }
 0x282   : > { %v662_v20 = vpop.f32.mrf.mxu0  ;;  %3382 = vmatprep.subr.bf16.mxu0 %v4051_v2 }
 0x283   : > { %v663_v43 = vadd.f32 %v662_v20, %v545_v63 }
 0x284   : > { %v664_v44 = vpop.f32.mrf.mxu0 }
 0x285   : > { %v682_v46 = vmul.f32 0.25, %v663_v43  ;;  %v4379_v47 = vpack.c.bf16 %v663_v43, %v659_v41  ;;  %v665_v28 = vadd.f32 %v664_v44, %v549_v6 }
 0x286   : > { %v668_v50 = vpop.f32.mrf.mxu0 }
 0x287   : > { %v4381_v51 = vpack.c.bf16 %v682_v46, %v681_v45  ;;  %v4383_v52 = vpack.c.bf16 %v665_v28, %v661_v42  ;;  %801 = vrot.lane.b32.xlu1 %v4379_v47, %s4053_s17  ;;  %v669_v54 = vadd.f32 %v668_v50, %v545_v63 }
 0x288   : > { %v670_v53 = vpop.f32.mrf.mxu0 }
 0x289   : > { %v671_v55 = vadd.f32 %v670_v53, %v549_v6  ;;  %v683_v57 = vmul.f32 0.25, %v669_v54 }
 0x28a   : > { %v672_v21 = vpop.f32.mrf.mxu0 }
 0x28b   : > { %v673_v56 = vadd.f32 %v672_v21, %v545_v63 }
 0x28c   : > { %v674_v29 = vpop.f32.mrf.mxu0 }
 0x28d   : > { %v684_v58 = vmul.f32 0.25, %v673_v56  ;;  %v4387_v59 = vpack.c.bf16 %v673_v56, %v669_v54  ;;  %v675_v60 = vadd.f32 %v674_v29, %v549_v6 }
 0x28f   : > { %v4389_v61 = vpack.c.bf16 %v684_v58, %v683_v57  ;;  %v4391_v39 = vpack.c.bf16 %v675_v60, %v671_v55  ;;  %851 = vrot.lane.b32.xlu1 %v4387_v59, %s4053_s17  ;;  %s4874_s17 = scalar_lea.hbm %s4929_s8, %s3255_s3 }
 0x2e9   : > { %v701_v38 = vpop.permute.xlu0 %700 }
 0x2ea   : > { %v707_v62 = vsel %vm702_vm2, %v701_v38, 0 }
 0x2eb   : > { %3341 = vmatpush3.bf16.xpose.msra.mxu1 %v707_v62 }
 0x2ec   : > { %3346 = vmatprep.subr.bf16.mxu1 %v4051_v2 }
 0x2f1   : > { %v752_v0 = vpop.permute.xlu1 %751 }
 0x2f2   : > { %v757_v1 = vsel %vm702_vm2, %v752_v0, 0  ;;  %3343 = vmatmul.mubr.msk.bf16.vlgmr.msra.gmra.mxu1 %vm702_vm2, %v4363_v19 }
 0x2f3   : > { %3347 = vmatpush3.bf16.xpose.msra.mxu1 %v757_v1  ;;  %3348 = vmatprep.mubr.msk.bf16.mxu1 %vm4052_vm1, %v4051_v2 }
 0x2f4   : > { %3352 = vmatprep.subr.bf16.mxu1 %v4051_v2 }
 0x2f9   : > { %v802_v49 = vpop.permute.xlu1 %801 }
 0x2fa   : > { %v807_v3 = vsel %vm702_vm2, %v802_v49, 0  ;;  %3349 = vmatmul.mubr.msk.bf16.vlgmr.msra.gmra.mxu1 %vm702_vm2, %v4371_v36 }
 0x2fb   : > { %3353 = vmatpush3.bf16.xpose.msra.mxu1 %v807_v3  ;;  %3354 = vmatprep.mubr.msk.bf16.mxu1 %vm4052_vm1, %v4051_v2 }
 0x2fc   : > { %3358 = vmatprep.subr.bf16.mxu1 %v4051_v2 }
 0x301   : > { %v852_v48 = vpop.permute.xlu1 %851 }
 0x302   : > { %v857_v4 = vsel %vm702_vm2, %v852_v48, 0  ;;  %3355 = vmatmul.mubr.msk.bf16.vlgmr.msra.gmra.mxu1 %vm702_vm2, %v4381_v51 }
 0x303   : > { %3359 = vmatpush3.bf16.xpose.msra.mxu1 %v857_v4  ;;  %3360 = vmatprep.mubr.msk.bf16.mxu1 %vm4052_vm1, %v4051_v2 }
 0x304   : > { %3364 = vmatprep.subr.bf16.mxu1 %v4051_v2 }
 0x30a   : > { %3361 = vmatmul.mubr.msk.bf16.vlgmr.msra.gmra.mxu1 %vm702_vm2, %v4389_v61 }
 0x30b   : > { %3365 = vmatpush3.bf16.msra.mxu1 %v4365_v22  ;;  %3366 = vmatprep.mubr.msk.bf16.mxu1 %vm4052_vm1, %v4051_v2 }
 0x30c   : > { %3376 = vmatprep.subr.bf16.mxu1 %v4051_v2 }
 0x3b2   : > { %v743_v63 = vpop.f32.mrf.mxu1 }
 0x3b3   : > { %v744_v6 = vadd.f32 %v743_v63, %v697_v5 }
 0x3b4   : > { %v3344_v7 = vpop.f32.mrf.mxu1 }
 0x3b5   : > { %v900_v9 = vsel %vm702_vm2, %v744_v6, -inf }
 0x3b6   : > { %901 = vmax.xlane.f32.xlu0 %v900_v9  ;;  %v746_v10 = vpop.f32.mrf.mxu1 }
 0x3b7   : > { %v747_v11 = vadd.f32 %v746_v10, %v698_v8 }
 0x3b8   : > { %v3345_v12 = vpop.f32.mrf.mxu1 }
 0x3b9   : > { %v903_v13 = vsel %vm702_vm2, %v747_v11, -inf }
 0x3ba   : > { %904 = vmax.xlane.f32.xlu1 %v903_v13  ;;  %v793_v14 = vpop.f32.mrf.mxu1 }
 0x3bb   : > { %v794_v15 = vadd.f32 %v793_v14, %v697_v5 }
 0x3bc   : > { %v3350_v17 = vpop.f32.mrf.mxu1 }
 0x3bd   : > { %v906_v18 = vsel %vm702_vm2, %v794_v15, -inf }
 0x3be   : > { %907 = vmax.xlane.f32.xlu0 %v906_v18  ;;  %v796_v23 = vpop.f32.mrf.mxu1 }
 0x3bf   : > { %v797_v24 = vadd.f32 %v796_v23, %v698_v8 }
 0x3c0   : > { %v3351_v25 = vpop.f32.mrf.mxu1 }
 0x3c1   : > { %v909_v26 = vsel %vm702_vm2, %v797_v24, -inf }
 0x3c2   : > { %910 = vmax.xlane.f32.xlu0 %v909_v26  ;;  %v843_v27 = vpop.f32.mrf.mxu1 }
 0x3c3   : > { %v844_v30 = vadd.f32 %v843_v27, %v697_v5 }
 0x3c4   : > { %v3356_v31 = vpop.f32.mrf.mxu1 }
 0x3c5   : > { %v912_v32 = vsel %vm702_vm2, %v844_v30, -inf }
 0x3c6   : > { %913 = vmax.xlane.f32.xlu0 %v912_v32  ;;  %v846_v34 = vpop.f32.mrf.mxu1 }
 0x3c7   : > { %v847_v35 = vadd.f32 %v846_v34, %v698_v8 }
 0x3c8   : > { %v3357_v40 = vpop.f32.mrf.mxu1 }
 0x3c9   : > { %v915_v41 = vsel %vm702_vm2, %v847_v35, -inf }
 0x3ca   : > { %916 = vmax.xlane.f32.xlu1 %v915_v41  ;;  %v893_v42 = vpop.f32.mrf.mxu1 }
 0x3cb   : > { %v894_v20 = vadd.f32 %v893_v42, %v697_v5 }
 0x3cc   : > { %v3362_v43 = vpop.f32.mrf.mxu1 }
 0x3cd   : > { %v918_v44 = vsel %vm702_vm2, %v894_v20, -inf }
 0x3ce   : > { %919 = vmax.xlane.f32.xlu0 %v918_v44  ;;  %v896_v45 = vpop.f32.mrf.mxu1 }
 0x3cf   : > { %v897_v46 = vadd.f32 %v896_v45, %v698_v8 }
 0x3d0   : > { %v3363_v28 = vpop.f32.mrf.mxu1 }
 0x3d1   : > { %v921_v50 = vsel %vm702_vm2, %v897_v46, -inf }
 0x3d2   : > { %922 = vmax.xlane.f32.xlu1 %v921_v50 }
 0x43f   : > { %v902_v53 = vpop.xlane.xlu0 %901 }
 0x440   : > { %v924_v54 = vsub.f32 %v744_v6, %v902_v53 }
 0x442   : > { %v932_v55 = vmul.f32 1.442695, %v924_v54 }
 0x443   : > { %v905_v21 = vpop.xlane.xlu1 %904 }
 0x444   : > { %3707 = vpow2.f32 %v932_v55  ;;  %v925_v56 = vsub.f32 %v747_v11, %v905_v21 }
 0x446   : > { %v934_v29 = vmul.f32 1.442695, %v925_v56 }
 0x447   : > { %v908_v57 = vpop.xlane.xlu0 %907 }
 0x448   : > { %3709 = vpow2.f32 %v934_v29  ;;  %v926_v58 = vsub.f32 %v794_v15, %v908_v57 }
 0x44a   : > { %v936_v60 = vmul.f32 1.442695, %v926_v58 }
 0x44b   : > { %v911_v38 = vpop.xlane.xlu0 %910 }
 0x44c   : > { %3711 = vpow2.f32 %v936_v60  ;;  %v927_v62 = vsub.f32 %v797_v24, %v911_v38 }
 0x44e   : > { %v938_v0 = vmul.f32 1.442695, %v927_v62 }
 0x44f   : > { %v914_v1 = vpop.xlane.xlu0 %913 }
 0x450   : > { %3713 = vpow2.f32 %v938_v0  ;;  %v928_v49 = vsub.f32 %v844_v30, %v914_v1 }
 0x451   : > { %v3708_v3 = vpop.eup %3707 }
 0x452   : > { %v940_v48 = vmul.f32 1.442695, %v928_v49  ;;  %v948_v4 = vsel %vm702_vm2, %v3708_v3, 0.0 }
 0x453   : > { %v917_v5 = vpop.xlane.xlu1 %916  ;;  %949 = vadd.xlane.f32.xlu0 %v948_v4 }
 0x454   : > { %3715 = vpow2.f32 %v940_v48  ;;  %v929_v63 = vsub.f32 %v847_v35, %v917_v5 }
 0x455   : > { %v3710_v6 = vpop.eup %3709 }
 0x456   : > { %v942_v7 = vmul.f32 1.442695, %v929_v63  ;;  %v951_v8 = vsel %vm702_vm2, %v3710_v6, 0.0 }
 0x457   : > { %v920_v9 = vpop.xlane.xlu0 %919  ;;  %952 = vadd.xlane.f32.xlu1 %v951_v8 }
 0x458   : > { %3717 = vpow2.f32 %v942_v7  ;;  %v930_v10 = vsub.f32 %v894_v20, %v920_v9 }
 0x459   : > { %v3712_v11 = vpop.eup %3711 }
 0x45a   : > { %v944_v12 = vmul.f32 1.442695, %v930_v10  ;;  %v954_v13 = vsel %vm702_vm2, %v3712_v11, 0.0 }
 0x45b   : > { %955 = vadd.xlane.f32.xlu0 %v954_v13  ;;  %v923_v27 = vpop.xlane.xlu1 %922 }
 0x45c   : > { %3719 = vpow2.f32 %v944_v12  ;;  %v931_v30 = vsub.f32 %v897_v46, %v923_v27 }
 0x45d   : > { %v3714_v14 = vpop.eup %3713 }
 0x45e   : > { %v957_v15 = vsel %vm702_vm2, %v3714_v14, 0.0  ;;  %v946_v31 = vmul.f32 1.442695, %v931_v30 }
 0x45f   : > { %958 = vadd.xlane.f32.xlu1 %v957_v15 }
 0x460   : > { %3721 = vpow2.f32 %v946_v31 }
 0x461   : > { %v3716_v17 = vpop.eup %3715 }
 0x462   : > { %v960_v18 = vsel %vm702_vm2, %v3716_v17, 0.0 }
 0x463   : > { %961 = vadd.xlane.f32.xlu0 %v960_v18 }
 0x465   : > { %v3718_v23 = vpop.eup %3717 }
 0x466   : > { %v963_v24 = vsel %vm702_vm2, %v3718_v23, 0.0 }
 0x467   : > { %964 = vadd.xlane.f32.xlu1 %v963_v24 }
 0x469   : > { %v4435_v25 = vpop.eup %3719 }
 0x46a   : > { %v966_v26 = vsel %vm702_vm2, %v4435_v25, 0.0 }
 0x46b   : > { %967 = vadd.xlane.f32.xlu0 %v966_v26 }
 0x46d   : > { %v4447_v32 = vpop.eup %3721 }
 0x46e   : > { %v969_v34 = vsel %vm702_vm2, %v4447_v32, 0.0 }
 0x478   : > { %1232 = vrot.lane.b32.xlu1 %v4369_v33, %s4054_s20 }
 0x47c   : > { %1178 = vrot.lane.b32.xlu1 %v4363_v19, %s4055_s14 }
 0x481   : > { %1180 = vrot.lane.b32.xlu0 %v4361_v16, %s4054_s20 }
 0x485   : > { %1230 = vrot.lane.b32.xlu0 %v4371_v36, %s4055_s14 }
 0x489   : > { %1282 = vrot.lane.b32.xlu0 %v4381_v51, %s4055_s14 }
 0x4a0   : > { %970 = vadd.xlane.f32.xlu1 %v969_v34 }
 0x4b1   : > { %1284 = vrot.lane.b32.xlu1 %v4379_v47, %s4054_s20 }
 0x4b5   : > { %1336 = vrot.lane.b32.xlu1 %v4387_v59, %s4054_s20  ;;  %s3967_s20 = scalar_lea.vmem %s4876_s13, 1024 }
 0x4b6   : > { %p3968_p3 = scmp.ne.s32.totalorder %s4876_s13, %s3967_s20 }
 0x4b8   : > { %p3969_p9 = pnand %p3968_p3, %p4954_p12 }
 0x4b9   : > { %1334 = vrot.lane.b32.xlu1 %v4389_v61, %s4055_s14 }
 0x4ba   : > { %p3970_p7 = pneg %p3969_p9 }
 0x4dc   : > { %v950_v35 = vpop.xlane.xlu0 %949 }
 0x4dd   : > { %3723 = vrcp.f32 %v950_v35 }
 0x4e0   : > { %v953_v40 = vpop.xlane.xlu1 %952 }
 0x4e1   : > { %3725 = vrcp.f32 %v953_v40 }
 0x4e4   : > { %v956_v41 = vpop.xlane.xlu0 %955 }
 0x4e5   : > { %3727 = vrcp.f32 %v956_v41 }
 0x4e8   : > { %v959_v42 = vpop.xlane.xlu1 %958 }
 0x4e9   : > { %3729 = vrcp.f32 %v959_v42 }
 0x4ea   : > { %v3724_v20 = vpop.eup %3723 }
 0x4eb   : > { %v980_v45 = vmul.f32 %v3724_v20, %v3708_v3  ;;  %v1175_v20 = vld [vmem:[#allocation8 + $0x10] sm:$0xff] }
 0x4ec   : > { %v962_v43 = vpop.xlane.xlu0 %961 }
 0x4ed   : > { %3731 = vrcp.f32 %v962_v43 }
 0x4ee   : > { %v3726_v44 = vpop.eup %3725 }
 0x4ef   : > { %v981_v46 = vmul.f32 %v3726_v44, %v3710_v6 }
 0x4f0   : > { %v965_v28 = vpop.xlane.xlu1 %964 }
 0x4f1   : > { %3733 = vrcp.f32 %v965_v28  ;;  %v988_v50 = vpack.c.bf16 %v981_v46, %v980_v45  ;;  %v1176_v46 = vld [vmem:[#allocation8 + $0x18] sm:$0xff] }
 0x4f2   : > { %v3728_v53 = vpop.eup %3727 }
 0x4f3   : > { %3367 = vmatmul.mubr.msk.bf16.vlgmr.msra.gmra.mxu1 %vm702_vm2, %v988_v50  ;;  %v982_v55 = vmul.f32 %v3728_v53, %v3712_v11 }
 0x4f4   : > { %3377 = vmatpush3.bf16.msra.mxu1 %v4383_v52  ;;  %3378 = vmatprep.mubr.msk.bf16.mxu1 %vm4052_vm1, %v4051_v2  ;;  %v968_v29 = vpop.xlane.xlu0 %967  ;;  %v1233_v49 = vpop.permute.xlu1 %1232 }
 0x4f5   : > { %3388 = vmatprep.subr.bf16.mxu1 %v4051_v2  ;;  %3735 = vrcp.f32 %v968_v29  ;;  %v1238_v12 = vsel %vm702_vm2, %v1233_v49, 0 }
 0x4f6   : > { %v3730_v54 = vpop.eup %3729 }
 0x4f7   : > { %v983_v21 = vmul.f32 %v3730_v54, %v3714_v14 }
 0x4f8   : > { %v1181_v62 = vpop.permute.xlu0 %1180  ;;  %v1179_v3 = vpop.permute.xlu1 %1178 }
 0x4f9   : > { %v989_v56 = vpack.c.bf16 %v983_v21, %v982_v55  ;;  %v1186_v1 = vsel %vm702_vm2, %v1181_v62, 0 }
 0x4fa   : > { %v3732_v57 = vpop.eup %3731 }
 0x4fb   : > { %3373 = vmatmul.mubr.msk.bf16.vlgmr.msra.gmra.mxu0 %vm702_vm2, %v989_v56  ;;  %v984_v60 = vmul.f32 %v3732_v57, %v3716_v17 }
 0x4fc   : > { %3383 = vmatpush3.bf16.msra.mxu0 %v4391_v39  ;;  %3384 = vmatprep.mubr.msk.bf16.mxu0 %vm4052_vm1, %v4051_v2  ;;  %v1231_v63 = vpop.permute.xlu0 %1230 }
 0x4fd   : > { %3394 = vmatprep.subr.bf16.mxu0 %v4051_v2 }
 0x4fe   : > { %v3734_v58 = vpop.eup %3733 }
 0x4ff   : > { %v985_v38 = vmul.f32 %v3734_v58, %v3718_v23 }
 0x500   : > { %v1283_v7 = vpop.permute.xlu0 %1282 }
 0x501   : > { %v990_v0 = vpack.c.bf16 %v985_v38, %v984_v60 }
 0x502   : > { %v3736_v6 = vpop.eup %3735 }
 0x503   : > { %3379 = vmatmul.mubr.msk.bf16.vlgmr.msra.gmra.mxu1 %vm702_vm2, %v990_v0  ;;  %v986_v9 = vmul.f32 %v3736_v6, %v4435_v25 }
 0x504   : > { %3389 = vmatpush3.bf16.xpose.msra.mxu1 %v1186_v1  ;;  %3390 = vmatprep.mubr.msk.bf16.mxu1 %vm4052_vm1, %v4051_v2 }
 0x505   : > { %3400 = vmatprep.subr.bf16.mxu1 %v4051_v2 }
 0x50b   : > { %3391 = vmatmul.mubr.msk.bf16.vlgmr.msra.gmra.mxu1 %vm702_vm2, %v1179_v3 }
 0x50c   : > { %3402 = vmatprep.mubr.msk.bf16.mxu1 %vm4052_vm1, %v4051_v2 }
 0x529   : > { %v971_v48 = vpop.xlane.xlu1 %970 }
 0x52a   : > { %3737 = vrcp.f32 %v971_v48 }
 0x52d   : > { %v1285_v4 = vpop.permute.xlu1 %1284 }
 0x52e   : > { %v1290_v5 = vsel %vm702_vm2, %v1285_v4, 0 }
 0x52f   : > { %3401 = vmatpush3.bf16.xpose.msra.mxu1 %v1290_v5 }
 0x530   : > { %3412 = vmatprep.subr.bf16.mxu1 %v4051_v2 }
 0x531   : > { %v1337_v13 = vpop.permute.xlu1 %1336 }
 0x532   : > { %v1342_v14 = vsel %vm702_vm2, %v1337_v13, 0 }
 0x535   : > { %v1335_v15 = vpop.permute.xlu1 %1334 }
 0x536   : > { %3403 = vmatmul.mubr.msk.bf16.vlgmr.msra.gmra.mxu1 %vm702_vm2, %v1283_v7 }
 0x537   : > { %v3738_v8 = vpop.eup %3737  ;;  %3414 = vmatprep.mubr.msk.bf16.mxu1 %vm4052_vm1, %v4051_v2 }
 0x538   : > { %v987_v10 = vmul.f32 %v3738_v8, %v4447_v32 }
 0x53a   : > { %v991_v11 = vpack.c.bf16 %v987_v10, %v986_v9 }
 0x53c   : > { %3385 = vmatmul.mubr.msk.bf16.vlgmr.msra.gmra.mxu0 %vm702_vm2, %v991_v11 }
 0x53d   : > { %3395 = vmatpush3.bf16.xpose.msra.mxu0 %v1238_v12  ;;  %3396 = vmatprep.mubr.msk.bf16.mxu0 %vm4052_vm1, %v4051_v2 }
 0x53e   : > { %3406 = vmatprep.subr.bf16.mxu0 %v4051_v2 }
 0x544   : > { %3397 = vmatmul.mubr.msk.bf16.vlgmr.msra.gmra.mxu0 %vm702_vm2, %v1231_v63 }
 0x545   : > { %3407 = vmatpush3.bf16.xpose.msra.mxu0 %v1342_v14  ;;  %3408 = vmatprep.mubr.msk.bf16.mxu0 %vm4052_vm1, %v4051_v2 }
 0x546   : > { %3418 = vmatprep.subr.bf16.mxu0 %v4051_v2 }
 0x54c   : > { %3409 = vmatmul.mubr.msk.bf16.vlgmr.msra.gmra.mxu0 %vm702_vm2, %v1335_v15 }
 0x54d   : > { %3420 = vmatprep.mubr.msk.bf16.mxu0 %vm4052_vm1, %v4051_v2 }
 0x5b3   : > { %v4493_v17 = vpop.f32.mrf.mxu1 }
 0x5b5   : > { %v3368_v18 = vpop.f32.mrf.mxu1 }
 0x5b7   : > { %v4495_v23 = vpop.f32.mrf.mxu1 }
 0x5b8   : > { %v1168_v24 = vpack.c.bf16 %v4495_v23, %v4493_v17 }
 0x5b9   : > { %v3369_v25 = vpop.f32.mrf.mxu1 }
 0x5bb   : > { %v4499_v26 = vpop.f32.mrf.mxu0 }
 0x5bd   : > { %v3374_v27 = vpop.f32.mrf.mxu0 }
 0x5bf   : > { %v4501_v30 = vpop.f32.mrf.mxu0 }
 0x5c0   : > { %v1169_v31 = vpack.c.bf16 %v4501_v30, %v4499_v26 }
 0x5c1   : > { %v3375_v32 = vpop.f32.mrf.mxu0 }
 0x5c3   : > { %v4505_v34 = vpop.f32.mrf.mxu1 }
 0x5c5   : > { %v3380_v35 = vpop.f32.mrf.mxu1 }
 0x5c7   : > { %v4507_v40 = vpop.f32.mrf.mxu1 }
 0x5c8   : > { %v1170_v41 = vpack.c.bf16 %v4507_v40, %v4505_v34 }
 0x5c9   : > { %v3381_v42 = vpop.f32.mrf.mxu1 }
 0x5cb   : > { %v1222_v43 = vpop.f32.mrf.mxu1 }
 0x5cc   : > { %v1223_v44 = vadd.f32 %v1222_v43, %v1175_v20 }
 0x5cd   : > { %v3392_v45 = vpop.f32.mrf.mxu1 }
 0x5ce   : > { %v1385_v28 = vsel %vm702_vm2, %v1223_v44, -inf }
 0x5cf   : > { %1386 = vmax.xlane.f32.xlu0 %v1385_v28  ;;  %v1225_v50 = vpop.f32.mrf.mxu1 }
 0x5d0   : > { %v1226_v53 = vadd.f32 %v1225_v50, %v1176_v46 }
 0x5d1   : > { %v3393_v54 = vpop.f32.mrf.mxu1 }
 0x5d2   : > { %v1388_v55 = vsel %vm702_vm2, %v1226_v53, -inf }
 0x5d3   : > { %1389 = vmax.xlane.f32.xlu1 %v1388_v55 }
 0x5f6   : > { %v1326_v21 = vpop.f32.mrf.mxu1 }
 0x5f7   : > { %v1327_v8 = vadd.f32 %v1326_v21, %v1175_v20 }
 0x5f8   : > { %v3404_v56 = vpop.f32.mrf.mxu1 }
 0x5f9   : > { %v1397_v13 = vsel %vm702_vm2, %v1327_v8, -inf }
 0x5fa   : > { %v1329_v29 = vpop.f32.mrf.mxu1 }
 0x5fb   : > { %v1330_v57 = vadd.f32 %v1329_v29, %v1176_v46 }
 0x5fc   : > { %v4513_v58 = vpop.f32.mrf.mxu0  ;;  %v3405_v60 = vpop.f32.mrf.mxu1 }
 0x5fd   : > { %v1400_v38 = vsel %vm702_vm2, %v1330_v57, -inf }
 0x5fe   : > { %v3386_v62 = vpop.f32.mrf.mxu0  ;;  %1401 = vmax.xlane.f32.xlu1 %v1400_v38 }
 0x600   : > { %v4516_v0 = vpop.f32.mrf.mxu0 }
 0x601   : > { %v1171_v1 = vpack.c.bf16 %v4516_v0, %v4513_v58 }
 0x602   : > { %v3387_v49 = vpop.f32.mrf.mxu0 }
 0x604   : > { %v1274_v3 = vpop.f32.mrf.mxu0 }
 0x605   : > { %v1275_v48 = vadd.f32 %v1274_v3, %v1175_v20 }
 0x606   : > { %v3398_v4 = vpop.f32.mrf.mxu0 }
 0x607   : > { %v1391_v5 = vsel %vm702_vm2, %v1275_v48, -inf }
 0x608   : > { %v1277_v63 = vpop.f32.mrf.mxu0  ;;  %1392 = vmax.xlane.f32.xlu0 %v1391_v5 }
 0x609   : > { %v1278_v6 = vadd.f32 %v1277_v63, %v1176_v46 }
 0x60a   : > { %v3399_v7 = vpop.f32.mrf.mxu0 }
 0x60b   : > { %v1394_v9 = vsel %vm702_vm2, %v1278_v6, -inf }
 0x60c   : > { %v1378_v10 = vpop.f32.mrf.mxu0  ;;  %1395 = vmax.xlane.f32.xlu0 %v1394_v9 }
 0x60d   : > { %v1379_v12 = vadd.f32 %v1378_v10, %v1175_v20 }
 0x60e   : > { %v3410_v11 = vpop.f32.mrf.mxu0 }
 0x60f   : > { %v1403_v25 = vsel %vm702_vm2, %v1379_v12, -inf }
 0x610   : > { %v1381_v14 = vpop.f32.mrf.mxu0  ;;  %1398 = vmax.xlane.f32.xlu0 %v1397_v13 }
 0x611   : > { %v4523_v15 = vadd.f32 %v1381_v14, %v1176_v46 }
 0x612   : > { %v3411_v18 = vpop.f32.mrf.mxu0 }
 0x613   : > { %v1406_v27 = vsel %vm702_vm2, %v4523_v15, -inf }
 0x614   : > { %1404 = vmax.xlane.f32.xlu0 %v1403_v25  ;;  %1407 = vmax.xlane.f32.xlu1 %v1406_v27 }
 0x658   : > { %v1387_v32 = vpop.xlane.xlu0 %1386 }
 0x659   : > { %v1409_v35 = vsub.f32 %v1223_v44, %v1387_v32 }
 0x65b   : > { %v1417_v42 = vmul.f32 1.442695, %v1409_v35 }
 0x65c   : > { %v1390_v43 = vpop.xlane.xlu1 %1389 }
 0x65d   : > { %3739 = vpow2.f32 %v1417_v42  ;;  %v1410_v20 = vsub.f32 %v1226_v53, %v1390_v43 }
 0x65f   : > { %v1419_v45 = vmul.f32 1.442695, %v1410_v20 }
 0x661   : > { %3741 = vpow2.f32 %v1419_v45 }
 0x66a   : > { %v4528_v28 = vpop.eup %3739 }
 0x66b   : > { %v1433_v46 = vsel %vm702_vm2, %v4528_v28, 0.0 }
 0x66c   : > { %1434 = vadd.xlane.f32.xlu0 %v1433_v46 }
 0x66e   : > { %v4532_v50 = vpop.eup %3741 }
 0x66f   : > { %v1436_v54 = vsel %vm702_vm2, %v4532_v50, 0.0 }
 0x670   : > { %1437 = vadd.xlane.f32.xlu1 %v1436_v54 }
 0x687   : > { %v1402_v55 = vpop.xlane.xlu1 %1401 }
 0x688   : > { %v1414_v56 = vsub.f32 %v1330_v57, %v1402_v55 }
 0x68a   : > { %v1427_v38 = vmul.f32 1.442695, %v1414_v56 }
 0x691   : > { %v1393_v44 = vpop.xlane.xlu0 %1392 }
 0x692   : > { %v1411_v21 = vsub.f32 %v1275_v48, %v1393_v44 }
 0x694   : > { %v1421_v29 = vmul.f32 1.442695, %v1411_v21 }
 0x695   : > { %v1396_v53 = vpop.xlane.xlu0 %1395 }
 0x696   : > { %3743 = vpow2.f32 %v1421_v29  ;;  %v1412_v60 = vsub.f32 %v1278_v6, %v1396_v53 }
 0x698   : > { %v1423_v62 = vmul.f32 1.442695, %v1412_v60 }
 0x699   : > { %v1399_v49 = vpop.xlane.xlu0 %1398 }
 0x69a   : > { %3745 = vpow2.f32 %v1423_v62  ;;  %v1413_v3 = vsub.f32 %v1327_v8, %v1399_v49 }
 0x69b   : > { %3747 = vpow2.f32 %v1427_v38 }
 0x69c   : > { %v1425_v4 = vmul.f32 1.442695, %v1413_v3 }
 0x69d   : > { %v1405_v5 = vpop.xlane.xlu0 %1404  ;;  %v1408_v18 = vpop.xlane.xlu1 %1407 }
 0x69e   : > { %3749 = vpow2.f32 %v1425_v4  ;;  %v1415_v63 = vsub.f32 %v1379_v12, %v1405_v5  ;;  %v1416_v25 = vsub.f32 %v4523_v15, %v1408_v18 }
 0x6a0   : > { %v1429_v7 = vmul.f32 1.442695, %v1415_v63  ;;  %v1431_v27 = vmul.f32 1.442695, %v1416_v25 }
 0x6a2   : > { %3751 = vpow2.f32 %v1429_v7 }
 0x6a3   : > { %v3744_v9 = vpop.eup %3743  ;;  %3753 = vpow2.f32 %v1431_v27 }
 0x6a4   : > { %v1439_v48 = vsel %vm702_vm2, %v3744_v9, 0.0 }
 0x6a5   : > { %1440 = vadd.xlane.f32.xlu0 %v1439_v48 }
 0x6a7   : > { %v3746_v57 = vpop.eup %3745 }
 0x6a8   : > { %v1442_v10 = vsel %vm702_vm2, %v3746_v57, 0.0  ;;  %v4538_v6 = vpop.eup %3747 }
 0x6a9   : > { %1443 = vadd.xlane.f32.xlu1 %v1442_v10  ;;  %v1448_v12 = vsel %vm702_vm2, %v4538_v6, 0.0 }
 0x6ab   : > { %v4540_v11 = vpop.eup %3749 }
 0x6ac   : > { %v1445_v8 = vsel %vm702_vm2, %v4540_v11, 0.0 }
 0x6ad   : > { %1446 = vadd.xlane.f32.xlu0 %v1445_v8  ;;  %1449 = vadd.xlane.f32.xlu1 %v1448_v12 }
 0x6af   : > { %v4546_v13 = vpop.eup %3751 }
 0x6b0   : > { %v1451_v14 = vsel %vm702_vm2, %v4546_v13, 0.0  ;;  %v3754_v32 = vpop.eup %3753 }
 0x6b1   : > { %1452 = vadd.xlane.f32.xlu0 %v1451_v14  ;;  %v1454_v35 = vsel %vm702_vm2, %v3754_v32, 0.0 }
 0x6be   : > { %1526 = vrot.lane.b32.xlu1 %v4373_v37, %s4055_s14 }
 0x6c2   : > { %1574 = vrot.lane.b32.xlu1 %v4383_v52, %s4055_s14 }
 0x6c7   : > { %1478 = vrot.lane.b32.xlu0 %v4365_v22, %s4055_s14 }
 0x6cb   : > { %1847 = vrot.lane.b32.xlu0 %v4361_v16, %s4056_s16 }
 0x6cf   : > { %1845 = vrot.lane.b32.xlu0 %v4363_v19, %s4057_s22 }
 0x6d3   : > { %1896 = vrot.lane.b32.xlu0 %v4371_v36, %s4057_s22 }
 0x6d7   : > { %1947 = vrot.lane.b32.xlu0 %v4381_v51, %s4057_s22 }
 0x6e6   : > { %1455 = vadd.xlane.f32.xlu1 %v1454_v35 }
 0x6f5   : > { %v1435_v42 = vpop.xlane.xlu0 %1434 }
 0x6f7   : > { %1622 = vrot.lane.b32.xlu1 %v4391_v39, %s4055_s14  ;;  %s4060_s14 = smov [#allocation11]  }
 0x6f9   : > { %v1438_v15 = vpop.xlane.xlu1 %1437 }
 0x6fa   : > { %3755 = vrcp.f32 %v1438_v15 }
 0x6fb   : > { %1898 = vrot.lane.b32.xlu1 %v4369_v33, %s4056_s16  ;;  %3757 = vrcp.f32 %v1435_v42 }
 0x6ff   : > { %1949 = vrot.lane.b32.xlu1 %v4379_v47, %s4056_s16 }
 0x703   : > { %2000 = vrot.lane.b32.xlu1 %v4387_v59, %s4056_s16  ;;  %s3971_s16 = sshll.u32 %s4060_s14, 4  ;;  %s3972_s16 = int_to_ptr.vmem [resolvable:$false] %s3971_s16 }
 0x704   : > { %p3974_p1 = scmp.lt.s32.totalorder %s4876_s13, %s3972_s16 }
 0x707   : > { %1998 = vrot.lane.b32.xlu1 %v4389_v61, %s4057_s22  ;;  %v3756_v54 = vpop.eup %3755 }
 0x708   : > { %v3758_v21 = vpop.eup %3757  ;;  %v1466_v56 = vmul.f32 %v3756_v54, %v4532_v50 }
 0x709   : > { %v1465_v60 = vmul.f32 %v3758_v21, %v4528_v28 }
 0x70b   : > { %v1473_v62 = vpack.c.bf16 %v1466_v56, %v1465_v60 }
 0x72e   : > { %v1441_v43 = vpop.xlane.xlu0 %1440 }
 0x72f   : > { %3759 = vrcp.f32 %v1441_v43 }
 0x732   : > { %v1444_v20 = vpop.xlane.xlu1 %1443 }
 0x733   : > { %3761 = vrcp.f32 %v1444_v20 }
 0x736   : > { %v1447_v45 = vpop.xlane.xlu0 %1446  ;;  %v1450_v46 = vpop.xlane.xlu1 %1449 }
 0x737   : > { %3763 = vrcp.f32 %v1447_v45 }
 0x738   : > { %3765 = vrcp.f32 %v1450_v46 }
 0x73a   : > { %v1453_v55 = vpop.xlane.xlu0 %1452  ;;  %v1527_v44 = vpop.permute.xlu1 %1526 }
 0x73b   : > { %3419 = vmatpush3.bf16.msra.mxu0 %v1527_v44  ;;  %3767 = vrcp.f32 %v1453_v55 }
 0x73c   : > { %3430 = vmatprep.subr.bf16.mxu0 %v4051_v2  ;;  %v3760_v29 = vpop.eup %3759 }
 0x73d   : > { %v1467_v49 = vmul.f32 %v3760_v29, %v3744_v9 }
 0x73e   : > { %v1479_v53 = vpop.permute.xlu0 %1478  ;;  %v1575_v4 = vpop.permute.xlu1 %1574 }
 0x73f   : > { %3413 = vmatpush3.bf16.msra.mxu1 %v1479_v53 }
 0x740   : > { %v3762_v38 = vpop.eup %3761  ;;  %3424 = vmatprep.subr.bf16.mxu1 %v4051_v2 }
 0x741   : > { %v1468_v3 = vmul.f32 %v3762_v38, %v3746_v57  ;;  %v3687_v57 = vld [vmem:[#allocation10] sm:$0xff]  }
 0x742   : > { %3415 = vmatmul.mubr.msk.bf16.vlgmr.msra.gmra.mxu1 %vm702_vm2, %v1473_v62  ;;  %v1848_v17 = vpop.permute.xlu0 %1847 }
 0x743   : > { %3425 = vmatpush3.bf16.msra.mxu1 %v1575_v4  ;;  %v1474_v5 = vpack.c.bf16 %v1468_v3, %v1467_v49  ;;  %3426 = vmatprep.mubr.msk.bf16.mxu1 %vm4052_vm1, %v4051_v2  ;;  %v1853_v20 = vsel %vm702_vm2, %v1848_v17, 0 }
 0x744   : > { %v3764_v50 = vpop.eup %3763 }
 0x745   : > { %v3766_v63 = vpop.eup %3765  ;;  %3421 = vmatmul.mubr.msk.bf16.vlgmr.msra.gmra.mxu0 %vm702_vm2, %v1474_v5  ;;  %v1469_v28 = vmul.f32 %v3764_v50, %v4540_v11 }
 0x746   : > { %v1470_v7 = vmul.f32 %v3766_v63, %v4538_v6  ;;  %3432 = vmatprep.mubr.msk.bf16.mxu0 %vm4052_vm1, %v4051_v2  ;;  %v3688_v6 = vld [vmem:[#allocation10 + $0x8] sm:$0xff]  }
 0x747   : > { %3436 = vmatprep.subr.bf16.mxu1 %v3688_v6 }
 0x748   : > { %v1475_v9 = vpack.c.bf16 %v1470_v7, %v1469_v28  ;;  %v3768_v8 = vpop.eup %3767 }
 0x749   : > { %v1471_v14 = vmul.f32 %v3768_v8, %v4546_v13 }
 0x74a   : > { %3427 = vmatmul.mubr.msk.bf16.vlgmr.msra.gmra.mxu1 %vm702_vm2, %v1475_v9 }
 0x74b   : > { %3437 = vmatpush3.bf16.msra.mxu1 %v3688_v6 }
 0x74c   : > { %3456 = vmatprep.subr.bf16.mxu1 %v4051_v2 }
 0x76f   : > { %v1456_v48 = vpop.xlane.xlu1 %1455 }
 0x770   : > { %3769 = vrcp.f32 %v1456_v48 }
 0x773   : > { %v1623_v10 = vpop.permute.xlu1 %1622 }
 0x774   : > { %3431 = vmatpush3.bf16.msra.mxu0 %v1623_v10 }
 0x775   : > { %3446 = vmatprep.subr.bf16.mxu0 %v3687_v57 }
 0x777   : > { %v1899_v25 = vpop.permute.xlu1 %1898 }
 0x778   : > { %v1904_v27 = vsel %vm702_vm2, %v1899_v25, 0 }
 0x77b   : > { %v1950_v23 = vpop.permute.xlu1 %1949 }
 0x77c   : > { %v1955_v3 = vsel %vm702_vm2, %v1950_v23, 0 }
 0x77d   : > { %v3770_v12 = vpop.eup %3769 }
 0x77e   : > { %v1472_v11 = vmul.f32 %v3770_v12, %v3754_v32 }
 0x77f   : > { %v2001_v26 = vpop.permute.xlu1 %2000 }
 0x780   : > { %v1476_v18 = vpack.c.bf16 %v1472_v11, %v1471_v14 }
 0x782   : > { %3433 = vmatmul.mubr.msk.bf16.vlgmr.msra.gmra.mxu0 %vm702_vm2, %v1476_v18 }
 0x783   : > { %3448 = vmatprep.mubr.msk.bf16.mxu0 %vm702_vm2, %v1168_v24  ;;  %3447 = vmatpush3.bf16.msra.mxu0 %v3687_v57  ;;  %v1846_v24 = vpop.permute.xlu0 %1845  ;;  %v1999_v34 = vpop.permute.xlu1 %1998 }
 0x784   : > { %3462 = vmatprep.subr.bf16.mxu0 %v4051_v2 }
 0x787   : > { %v1897_v30 = vpop.permute.xlu0 %1896 }
 0x78a   : > { %3449 = vmatmul.mubr.msk.bf16.vlgmr.msra.gmra.mxu0 %vm702_vm2, %v1169_v31  ;;  %v2006_v31 = vsel %vm702_vm2, %v2001_v26, 0  ;;  %v1843_v26 = vld [vmem:[#allocation8 + $0x20] sm:$0xff] }
 0x78b   : > { %3463 = vmatpush3.bf16.xpose.msra.mxu0 %v1904_v27  ;;  %3452 = vmatprep.mubr.msk.bf16.mxu0 %vm702_vm2, %v1170_v41  ;;  %v1948_v63 = vpop.permute.xlu0 %1947 }
 0x78c   : > { %3474 = vmatprep.subr.bf16.mxu0 %v4051_v2 }
 0x792   : > { %3453 = vmatmul.mubr.msk.bf16.gmra.mxu0 %vm702_vm2, %v1171_v1 }
 0x793   : > { %3464 = vmatprep.mubr.msk.bf16.mxu0 %vm4052_vm1, %v4051_v2 }
 0x79a   : > { %3465 = vmatmul.mubr.msk.bf16.vlgmr.msra.gmra.mxu0 %vm702_vm2, %v1897_v30 }
 0x79b   : > { %3475 = vmatpush3.bf16.xpose.msra.mxu0 %v2006_v31  ;;  %3476 = vmatprep.mubr.msk.bf16.mxu0 %vm4052_vm1, %v4051_v2 }
 0x79c   : > { %3486 = vmatprep.subr.bf16.mxu0 %v4051_v2 }
 0x7a2   : > { %3477 = vmatmul.mubr.msk.bf16.vlgmr.msra.gmra.mxu0 %vm702_vm2, %v1999_v34 }
 0x7a3   : > { %3488 = vmatprep.mubr.msk.bf16.mxu0 %vm4052_vm1, %v4051_v2 }
 0x802   : > { %v1518_v40 = vpop.f32.mrf.mxu1 }
 0x804   : > { %v3416_v41 = vpop.f32.mrf.mxu1 }
 0x805   : > { %v1566_v58 = vpop.f32.mrf.mxu0 }
 0x806   : > { %v1521_v0 = vpop.f32.mrf.mxu1 }
 0x807   : > { %v1669_v1 = vpack.c.bf16 %v1521_v0, %v1518_v40  ;;  %v3422_v13 = vpop.f32.mrf.mxu0 }
 0x808   : > { %v3417_v32 = vpop.f32.mrf.mxu1 }
 0x809   : > { %v1569_v35 = vpop.f32.mrf.mxu0  ;;  %3438 = vmatprep.mubr.msk.bf16.mxu1 %vm702_vm2, %v1669_v1 }
 0x80a   : > { %v1670_v15 = vpack.c.bf16 %v1569_v35, %v1566_v58  ;;  %v1614_v42 = vpop.f32.mrf.mxu1  ;;  %v1844_v58 = vld [vmem:[#allocation8 + $0x28] sm:$0xff] }
 0x80b   : > { %v3423_v43 = vpop.f32.mrf.mxu0 }
 0x80c   : > { %v3428_v45 = vpop.f32.mrf.mxu1  ;;  %3439 = vmatmul.mubr.msk.bf16.vlgmr.msra.gmra.mxu1 %vm702_vm2, %v1670_v15 }
 0x80d   : > { %3457 = vmatpush3.bf16.xpose.msra.mxu1 %v1853_v20 }
 0x80e   : > { %v1617_v46 = vpop.f32.mrf.mxu1  ;;  %3468 = vmatprep.subr.bf16.mxu1 %v4051_v2 }
 0x80f   : > { %v1671_v54 = vpack.c.bf16 %v1617_v46, %v1614_v42 }
 0x810   : > { %v3429_v55 = vpop.f32.mrf.mxu1 }
 0x811   : > { %3442 = vmatprep.mubr.msk.bf16.mxu1 %vm702_vm2, %v1671_v54 }
 0x842   : > { %v1662_v44 = vpop.f32.mrf.mxu0 }
 0x844   : > { %v3434_v21 = vpop.f32.mrf.mxu0 }
 0x846   : > { %v1665_v56 = vpop.f32.mrf.mxu0 }
 0x847   : > { %v1672_v29 = vpack.c.bf16 %v1665_v56, %v1662_v44 }
 0x848   : > { %v3435_v53 = vpop.f32.mrf.mxu0 }
 0x849   : > { %3443 = vmatmul.mubr.msk.bf16.gmra.mxu1 %vm702_vm2, %v1672_v29 }
 0x84a   : > { %v4623_v60 = vpop.f32.mrf.mxu0  ;;  %3458 = vmatprep.mubr.msk.bf16.mxu1 %vm4052_vm1, %v4051_v2 }
 0x84c   : > { %v4627_v38 = vpop.f32.mrf.mxu0 }
 0x84e   : > { %v4629_v62 = vpop.f32.mrf.mxu0 }
 0x850   : > { %v4631_v49 = vpop.f32.mrf.mxu0 }
 0x851   : > { %3459 = vmatmul.mubr.msk.bf16.vlgmr.msra.gmra.mxu1 %vm702_vm2, %v1846_v24 }
 0x852   : > { %3469 = vmatpush3.bf16.xpose.msra.mxu1 %v1955_v3  ;;  %v4635_v4 = vpop.f32.mrf.mxu0  ;;  %3470 = vmatprep.mubr.msk.bf16.mxu1 %vm4052_vm1, %v4051_v2 }
 0x853   : > { %3480 = vmatprep.subr.bf16.mxu1 %v4051_v2 }
 0x854   : > { %v4640_v5 = vpop.f32.mrf.mxu0 }
 0x856   : > { %v4642_v50 = vpop.f32.mrf.mxu0 }
 0x858   : > { %v4644_v28 = vpop.f32.mrf.mxu0 }
 0x859   : > { %3471 = vmatmul.mubr.msk.bf16.vlgmr.msra.gmra.mxu1 %vm702_vm2, %v1948_v63 }
 0x85a   : > { %v1940_v7 = vpop.f32.mrf.mxu0  ;;  %3482 = vmatprep.mubr.msk.bf16.mxu1 %vm4052_vm1, %v4051_v2 }
 0x85b   : > { %v1941_v40 = vadd.f32 %v1940_v7, %v1843_v26 }
 0x85c   : > { %v3466_v9 = vpop.f32.mrf.mxu0 }
 0x85d   : > { %v2055_v35 = vsel %vm702_vm2, %v1941_v40, -inf }
 0x85e   : > { %v1943_v48 = vpop.f32.mrf.mxu0 }
 0x85f   : > { %v1944_v32 = vadd.f32 %v1943_v48, %v1844_v58 }
 0x860   : > { %v3467_v57 = vpop.f32.mrf.mxu0 }
 0x861   : > { %v2058_v45 = vsel %vm702_vm2, %v1944_v32, -inf }
 0x862   : > { %v2042_v10 = vpop.f32.mrf.mxu0 }
 0x863   : > { %v2043_v44 = vadd.f32 %v2042_v10, %v1843_v26 }
 0x864   : > { %v3478_v8 = vpop.f32.mrf.mxu0 }
 0x865   : > { %v2067_v53 = vsel %vm702_vm2, %v2043_v44, -inf }
 0x866   : > { %v2045_v12 = vpop.f32.mrf.mxu0 }
 0x867   : > { %v2046_v21 = vadd.f32 %v2045_v12, %v1844_v58 }
 0x868   : > { %v3479_v14 = vpop.f32.mrf.mxu0 }
 0x869   : > { %v2070_v3 = vsel %vm702_vm2, %v2046_v21, -inf }
 0x8cc   : > { %v4649_v11 = vpop.f32.mrf.mxu1 }
 0x8ce   : > { %v4651_v18 = vpop.f32.mrf.mxu1 }
 0x8d0   : > { %v4653_v6 = vpop.f32.mrf.mxu1 }
 0x8d2   : > { %v4655_v25 = vpop.f32.mrf.mxu1 }
 0x909   : > { %v4657_v27 = vpop.f32.mrf.mxu1 }
 0x90b   : > { %v4659_v17 = vpop.f32.mrf.mxu1 }
 0x90d   : > { %v4661_v23 = vpop.f32.mrf.mxu1 }
 0x90f   : > { %v4663_v24 = vpop.f32.mrf.mxu1 }
 0x911   : > { %v1889_v30 = vpop.f32.mrf.mxu1 }
 0x912   : > { %v1890_v31 = vadd.f32 %v1889_v30, %v1843_v26 }
 0x913   : > { %v3460_v34 = vpop.f32.mrf.mxu1 }
 0x914   : > { %v2049_v41 = vsel %vm702_vm2, %v1890_v31, -inf }
 0x915   : > { %2050 = vmax.xlane.f32.xlu0 %v2049_v41  ;;  %v1892_v0 = vpop.f32.mrf.mxu1 }
 0x916   : > { %v1893_v1 = vadd.f32 %v1892_v0, %v1844_v58 }
 0x917   : > { %v3461_v13 = vpop.f32.mrf.mxu1 }
 0x918   : > { %v2052_v15 = vsel %vm702_vm2, %v1893_v1, -inf }
 0x919   : > { %2056 = vmax.xlane.f32.xlu0 %v2055_v35  ;;  %2053 = vmax.xlane.f32.xlu1 %v2052_v15  ;;  %v1991_v42 = vpop.f32.mrf.mxu1 }
 0x91a   : > { %v1992_v20 = vadd.f32 %v1991_v42, %v1843_v26 }
 0x91b   : > { %v3472_v43 = vpop.f32.mrf.mxu1 }
 0x91c   : > { %v2061_v56 = vsel %vm702_vm2, %v1992_v20, -inf }
 0x91d   : > { %2059 = vmax.xlane.f32.xlu0 %v2058_v45  ;;  %v1994_v46 = vpop.f32.mrf.mxu1 }
 0x91e   : > { %v4669_v54 = vadd.f32 %v1994_v46, %v1844_v58 }
 0x91f   : > { %v3473_v55 = vpop.f32.mrf.mxu1 }
 0x920   : > { %v2064_v29 = vsel %vm702_vm2, %v4669_v54, -inf }
 0x921   : > { %2062 = vmax.xlane.f32.xlu0 %v2061_v56  ;;  %2065 = vmax.xlane.f32.xlu1 %v2064_v29 }
 0x925   : > { %2068 = vmax.xlane.f32.xlu0 %v2067_v53  ;;  %2071 = vmax.xlane.f32.xlu1 %v2070_v3 }
 0x99e   : > { %v2051_v63 = vpop.xlane.xlu0 %2050 }
 0x99f   : > { %v2073_v30 = vsub.f32 %v1890_v31, %v2051_v63 }
 0x9a1   : > { %v2081_v35 = vmul.f32 1.442695, %v2073_v30 }
 0x9a2   : > { %v2057_v7 = vpop.xlane.xlu0 %2056  ;;  %v2054_v57 = vpop.xlane.xlu1 %2053 }
 0x9a3   : > { %v2075_v9 = vsub.f32 %v1941_v40, %v2057_v7  ;;  %v2074_v34 = vsub.f32 %v1893_v1, %v2054_v57 }
 0x9a5   : > { %v2085_v48 = vmul.f32 1.442695, %v2075_v9  ;;  %v2083_v40 = vmul.f32 1.442695, %v2074_v34 }
 0x9a6   : > { %v2060_v10 = vpop.xlane.xlu0 %2059 }
 0x9a7   : > { %3771 = vpow2.f32 %v2085_v48  ;;  %v2076_v8 = vsub.f32 %v1944_v32, %v2060_v10 }
 0x9a9   : > { %v2087_v12 = vmul.f32 1.442695, %v2076_v8 }
 0x9aa   : > { %v2063_v14 = vpop.xlane.xlu0 %2062  ;;  %v2066_v26 = vpop.xlane.xlu1 %2065 }
 0x9ab   : > { %3773 = vpow2.f32 %v2087_v12  ;;  %v2077_v15 = vsub.f32 %v1992_v20, %v2063_v14  ;;  %v2078_v9 = vsub.f32 %v4669_v54, %v2066_v26 }
 0x9ad   : > { %v2089_v32 = vmul.f32 1.442695, %v2077_v15  ;;  %v2091_v48 = vmul.f32 1.442695, %v2078_v9 }
 0x9ae   : > { %v2069_v41 = vpop.xlane.xlu0 %2068  ;;  %v2072_v58 = vpop.xlane.xlu1 %2071 }
 0x9af   : > { %v2079_v0 = vsub.f32 %v2043_v44, %v2069_v41  ;;  %v2080_v13 = vsub.f32 %v2046_v21, %v2072_v58 }
 0x9b1   : > { %v2093_v42 = vmul.f32 1.442695, %v2079_v0  ;;  %v2095_v43 = vmul.f32 1.442695, %v2080_v13 }
 0x9b3   : > { %3775 = vpow2.f32 %v2093_v42 }
 0x9b4   : > { %v3772_v45 = vpop.eup %3771  ;;  %3777 = vpow2.f32 %v2095_v43 }
 0x9b5   : > { %3779 = vpow2.f32 %v2081_v35  ;;  %v2103_v46 = vsel %vm702_vm2, %v3772_v45, 0.0 }
 0x9b6   : > { %3781 = vpow2.f32 %v2083_v40  ;;  %2104 = vadd.xlane.f32.xlu0 %v2103_v46 }
 0x9b7   : > { %3783 = vpow2.f32 %v2089_v32 }
 0x9b8   : > { %v3774_v31 = vpop.eup %3773  ;;  %3785 = vpow2.f32 %v2091_v48 }
 0x9b9   : > { %v2106_v1 = vsel %vm702_vm2, %v3774_v31, 0.0 }
 0x9ba   : > { %2107 = vadd.xlane.f32.xlu1 %v2106_v1 }
 0x9c0   : > { %v4678_v55 = vpop.eup %3775 }
 0x9c1   : > { %v4680_v20 = vpop.eup %3777  ;;  %v2115_v44 = vsel %vm702_vm2, %v4678_v55, 0.0 }
 0x9c2   : > { %v3780_v21 = vpop.eup %3779  ;;  %2116 = vadd.xlane.f32.xlu0 %v2115_v44  ;;  %v2118_v56 = vsel %vm702_vm2, %v4680_v20, 0.0 }
 0x9c3   : > { %v3782_v29 = vpop.eup %3781  ;;  %2119 = vadd.xlane.f32.xlu1 %v2118_v56  ;;  %v2097_v53 = vsel %vm702_vm2, %v3780_v21, 0.0 }
 0x9c4   : > { %v4687_v3 = vpop.eup %3783  ;;  %v2100_v63 = vsel %vm702_vm2, %v3782_v29, 0.0 }
 0x9c5   : > { %v2109_v7 = vsel %vm702_vm2, %v4687_v3, 0.0  ;;  %v4705_v57 = vpop.eup %3785 }
 0x9c6   : > { %2098 = vadd.xlane.f32.xlu0 %v2097_v53  ;;  %v2112_v10 = vsel %vm702_vm2, %v4705_v57, 0.0 }
 0x9c7   : > { %2101 = vadd.xlane.f32.xlu1 %v2100_v63 }
 0x9ca   : > { %2110 = vadd.xlane.f32.xlu0 %v2109_v7 }
 0x9d8   : > { %2188 = vrot.lane.b32.xlu1 %v4373_v37, %s4057_s22 }
 0x9dc   : > { %2235 = vrot.lane.b32.xlu1 %v4383_v52, %s4057_s22 }
 0x9e0   : > { %2141 = vrot.lane.b32.xlu0 %v4365_v22, %s4057_s22 }
 0x9e4   : > { %2432 = vrot.lane.b32.xlu0 %v4361_v16, %s4058_s10 }
 0x9e8   : > { %2483 = vrot.lane.b32.xlu0 %v4369_v33, %s4058_s10 }
 0x9ec   : > { %2481 = vrot.lane.b32.xlu0 %v4371_v36, %s4059_s24 }
 0x9f0   : > { %2532 = vrot.lane.b32.xlu0 %v4381_v51, %s4059_s24 }
 0xa00   : > { %2113 = vadd.xlane.f32.xlu1 %v2112_v10 }
 0xa11   : > { %2282 = vrot.lane.b32.xlu1 %v4391_v39, %s4057_s22  ;;  %s3973_s22 = scalar_lea.vmem %s3972_s16, 2048 }
 0xa12   : > { %p3975_p13 = scmp.lt.s32.totalorder %s3973_s22, %s3967_s20 }
 0xa14   : > { %p3976_p11 = por %p3975_p13, %p3974_p1 }
 0xa15   : > { %2430 = vrot.lane.b32.xlu1 %v4363_v19, %s4059_s24 }
 0xa16   : > { %p3977_p5 = pnand %p3976_p11, %p3970_p7 }
 0xa19   : > { %2534 = vrot.lane.b32.xlu1 %v4379_v47, %s4058_s10 }
 0xa1d   : > { %2585 = vrot.lane.b32.xlu1 %v4387_v59, %s4058_s10 }
 0xa21   : > { %2583 = vrot.lane.b32.xlu1 %v4389_v61, %s4059_s24 }
 0xa3f   : > { %v2105_v16 = vpop.xlane.xlu0 %2104 }
 0xa40   : > { %3787 = vrcp.f32 %v2105_v16 }
 0xa43   : > { %v2108_v33 = vpop.xlane.xlu1 %2107 }
 0xa44   : > { %3789 = vrcp.f32 %v2108_v33 }
 0xa4b   : > { %v2117_v36 = vpop.xlane.xlu0 %2116 }
 0xa4c   : > { %v2120_v51 = vpop.xlane.xlu1 %2119 }
 0xa4d   : > { %v3788_v54 = vpop.eup %3787 }
 0xa4e   : > { %v2131_v19 = vmul.f32 %v3788_v54, %v3772_v45 }
 0xa4f   : > { %v2099_v8 = vpop.xlane.xlu0 %2098 }
 0xa50   : > { %3791 = vrcp.f32 %v2099_v8  ;;  %v2102_v12 = vpop.xlane.xlu1 %2101 }
 0xa51   : > { %v3790_v14 = vpop.eup %3789  ;;  %3793 = vrcp.f32 %v2102_v12 }
 0xa52   : > { %v2132_v26 = vmul.f32 %v3790_v14, %v3774_v31  ;;  %3795 = vrcp.f32 %v2117_v36 }
 0xa53   : > { %v2111_v47 = vpop.xlane.xlu0 %2110  ;;  %3797 = vrcp.f32 %v2120_v51 }
 0xa54   : > { %v2189_v30 = vpop.permute.xlu1 %2188  ;;  %v2138_v59 = vpack.c.bf16 %v2132_v26, %v2131_v19  ;;  %3799 = vrcp.f32 %v2111_v47 }
 0xa55   : > { %3487 = vmatpush3.bf16.msra.mxu0 %v2189_v30 }
 0xa56   : > { %3498 = vmatprep.subr.bf16.mxu0 %v4051_v2 }
 0xa57   : > { %v2142_v61 = vpop.permute.xlu0 %2141 }
 0xa58   : > { %3489 = vmatmul.mubr.msk.bf16.vlgmr.msra.gmra.mxu0 %vm702_vm2, %v2138_v59  ;;  %3481 = vmatpush3.bf16.msra.mxu1 %v2142_v61  ;;  %v2236_v35 = vpop.permute.xlu1 %2235 }
 0xa59   : > { %3492 = vmatprep.subr.bf16.mxu1 %v4051_v2  ;;  %3500 = vmatprep.mubr.msk.bf16.mxu0 %vm4052_vm1, %v4051_v2 }
 0xa5b   : > { %v2433_v46 = vpop.permute.xlu0 %2432 }
 0xa5c   : > { %v2438_v1 = vsel %vm702_vm2, %v2433_v46, 0 }
 0xa5d   : > { %v3792_v34 = vpop.eup %3791 }
 0xa5e   : > { %v3794_v41 = vpop.eup %3793  ;;  %v2129_v58 = vmul.f32 %v3792_v34, %v3780_v21 }
 0xa5f   : > { %v2130_v0 = vmul.f32 %v3794_v41, %v3782_v29  ;;  %v3796_v15 = vpop.eup %3795  ;;  %v2484_v21 = vpop.permute.xlu0 %2483  ;;  %v4754_v41 = vld [vmem:[#allocation8 + $0x30] sm:$0xff] }
 0xa60   : > { %v3798_v42 = vpop.eup %3797  ;;  %v2135_v40 = vmul.f32 %v3796_v15, %v4678_v55  ;;  %v2489_v63 = vsel %vm702_vm2, %v2484_v21, 0 }
 0xa61   : > { %v2137_v13 = vpack.c.bf16 %v2130_v0, %v2129_v58  ;;  %v2136_v45 = vmul.f32 %v3798_v42, %v4680_v20  ;;  %v3800_v55 = vpop.eup %3799 }
 0xa62   : > { %v2133_v29 = vmul.f32 %v3800_v55, %v4687_v3  ;;  %v3689_v3 = vld [vmem:[#allocation10 + $0x10] sm:$0xff]  }
 0xa63   : > { %3483 = vmatmul.mubr.msk.bf16.vlgmr.msra.gmra.mxu1 %vm702_vm2, %v2137_v13  ;;  %v2140_v31 = vpack.c.bf16 %v2136_v45, %v2135_v40  ;;  %v2482_v48 = vpop.permute.xlu0 %2481 }
 0xa64   : > { %3493 = vmatpush3.bf16.msra.mxu1 %v2236_v35  ;;  %3494 = vmatprep.mubr.msk.bf16.mxu1 %vm4052_vm1, %v4051_v2  ;;  %v4757_v35 = vld [vmem:[#allocation8 + $0x38] sm:$0xff] }
 0xa65   : > { %3504 = vmatprep.subr.bf16.mxu1 %v3689_v3 }
 0xa89   : > { %v2114_v43 = vpop.xlane.xlu1 %2113 }
 0xa8a   : > { %3801 = vrcp.f32 %v2114_v43 }
 0xa8d   : > { %v2283_v32 = vpop.permute.xlu1 %2282 }
 0xa8e   : > { %3499 = vmatpush3.bf16.msra.mxu0 %v2283_v32 }
 0xa8f   : > { %3514 = vmatprep.subr.bf16.mxu0 %v4051_v2 }
 0xa91   : > { %3501 = vmatmul.mubr.msk.bf16.vlgmr.msra.gmra.mxu0 %vm702_vm2, %v2140_v31  ;;  %v2431_v44 = vpop.permute.xlu1 %2430 }
 0xa92   : > { %3515 = vmatpush3.bf16.xpose.msra.mxu0 %v2438_v1  ;;  %3516 = vmatprep.mubr.msk.bf16.mxu0 %vm4052_vm1, %v4051_v2 }
 0xa93   : > { %3520 = vmatprep.subr.bf16.mxu0 %v4051_v2 }
 0xa95   : > { %v2535_v56 = vpop.permute.xlu1 %2534 }
 0xa96   : > { %v2540_v47 = vsel %vm702_vm2, %v2535_v56, 0 }
 0xa97   : > { %v3802_v20 = vpop.eup %3801 }
 0xa98   : > { %v2134_v53 = vmul.f32 %v3802_v20, %v4705_v57 }
 0xa99   : > { %3517 = vmatmul.mubr.msk.bf16.vlgmr.msra.gmra.mxu0 %vm702_vm2, %v2431_v44  ;;  %v2586_v9 = vpop.permute.xlu1 %2585 }
 0xa9a   : > { %3521 = vmatpush3.bf16.xpose.msra.mxu0 %v2489_v63  ;;  %v2139_v7 = vpack.c.bf16 %v2134_v53, %v2133_v29  ;;  %3522 = vmatprep.mubr.msk.bf16.mxu0 %vm4052_vm1, %v4051_v2  ;;  %v2591_v10 = vsel %vm702_vm2, %v2586_v9, 0 }
 0xa9b   : > { %3532 = vmatprep.subr.bf16.mxu0 %v4051_v2 }
 0xa9c   : > { %3495 = vmatmul.mubr.msk.bf16.vlgmr.msra.gmra.mxu1 %vm702_vm2, %v2139_v7 }
 0xa9d   : > { %v2584_v57 = vpop.permute.xlu1 %2583  ;;  %3505 = vmatpush3.bf16.msra.mxu1 %v3689_v3 }
 0xa9e   : > { %3526 = vmatprep.subr.bf16.mxu1 %v4051_v2 }
 0xaa1   : > { %3523 = vmatmul.mubr.msk.bf16.vlgmr.msra.gmra.mxu0 %vm702_vm2, %v2482_v48 }
 0xaa2   : > { %3533 = vmatpush3.bf16.xpose.msra.mxu0 %v2591_v10  ;;  %3534 = vmatprep.mubr.msk.bf16.mxu0 %vm4052_vm1, %v4051_v2  ;;  %v2533_v10 = vpop.permute.xlu0 %2532 }
 0xaa3   : > { %3544 = vmatprep.subr.bf16.mxu0 %v4051_v2 }
 0xaa9   : > { %3535 = vmatmul.mubr.msk.bf16.vlgmr.msra.gmra.mxu0 %vm702_vm2, %v2584_v57 }
 0xaaa   : > { %3546 = vmatprep.mubr.msk.bf16.mxu0 %vm4052_vm1, %v4051_v2 }
 0xb18   : > { %v2228_v16 = vpop.f32.mrf.mxu0 }
 0xb1a   : > { %v3490_v33 = vpop.f32.mrf.mxu0 }
 0xb1b   : > { %v1820_v33 = vadd.f32 %v4623_v60, %v4649_v11 }
 0xb1c   : > { %v2231_v36 = vpop.f32.mrf.mxu0 }
 0xb1d   : > { %v2330_v19 = vpack.c.bf16 %v2231_v36, %v2228_v16 }
 0xb1e   : > { %v3491_v51 = vpop.f32.mrf.mxu0 }
 0xb1f   : > { %v1812_v51 = vadd.f32 %v4627_v38, %v4651_v18 }
 0xb23   : > { %v2181_v54 = vpop.f32.mrf.mxu1 }
 0xb25   : > { %v3484_v8 = vpop.f32.mrf.mxu1 }
 0xb27   : > { %v2184_v12 = vpop.f32.mrf.mxu1 }
 0xb28   : > { %v2329_v14 = vpack.c.bf16 %v2184_v12, %v2181_v54  ;;  %v1823_v12 = vadd.f32 %v4629_v62, %v4653_v6 }
 0xb29   : > { %v3485_v26 = vpop.f32.mrf.mxu1 }
 0xb2a   : > { %3506 = vmatprep.mubr.msk.bf16.mxu1 %vm702_vm2, %v2329_v14  ;;  %v1815_v26 = vadd.f32 %v4631_v49, %v4655_v25  ;;  %v1828_v49 = vadd.f32 %v4640_v5, %v4659_v17 }
 0xb2b   : > { %3507 = vmatmul.mubr.msk.bf16.vlgmr.msra.gmra.mxu1 %vm702_vm2, %v2330_v19 }
 0xb2c   : > { %3527 = vmatpush3.bf16.xpose.msra.mxu1 %v2540_v47 }
 0xb2d   : > { %3538 = vmatprep.subr.bf16.mxu1 %v4051_v2 }
 0xb51   : > { %v2322_v30 = vpop.f32.mrf.mxu0 }
 0xb53   : > { %v3502_v59 = vpop.f32.mrf.mxu0 }
 0xb55   : > { %v2325_v61 = vpop.f32.mrf.mxu0 }
 0xb56   : > { %v2332_v55 = vpack.c.bf16 %v2325_v61, %v2322_v30 }
 0xb57   : > { %v3503_v34 = vpop.f32.mrf.mxu0 }
 0xb58   : > { %v1836_v34 = vadd.f32 %v4635_v4, %v4657_v27  ;;  %v1831_v27 = vadd.f32 %v4644_v28, %v4663_v24 }
 0xb59   : > { %v2474_v58 = vpop.f32.mrf.mxu0 }
 0xb5a   : > { %v2475_v0 = vadd.f32 %v2474_v58, %v4754_v41 }
 0xb5b   : > { %v3518_v13 = vpop.f32.mrf.mxu0 }
 0xb5c   : > { %v2275_v15 = vpop.f32.mrf.mxu1  ;;  %v2634_v42 = vsel %vm702_vm2, %v2475_v0, -inf }
 0xb5d   : > { %2635 = vmax.xlane.f32.xlu0 %v2634_v42  ;;  %v2477_v43 = vpop.f32.mrf.mxu0 }
 0xb5e   : > { %v2478_v40 = vadd.f32 %v2477_v43, %v4757_v35  ;;  %v3496_v45 = vpop.f32.mrf.mxu1 }
 0xb5f   : > { %v3519_v32 = vpop.f32.mrf.mxu0 }
 0xb60   : > { %v2278_v46 = vpop.f32.mrf.mxu1  ;;  %v2637_v31 = vsel %vm702_vm2, %v2478_v40, -inf }
 0xb61   : > { %v2331_v1 = vpack.c.bf16 %v2278_v46, %v2275_v15  ;;  %2638 = vmax.xlane.f32.xlu1 %v2637_v31  ;;  %v2525_v44 = vpop.f32.mrf.mxu0  ;;  %v1839_v15 = vadd.f32 %v4642_v50, %v4661_v23 }
 0xb62   : > { %v2526_v21 = vadd.f32 %v2525_v44, %v4754_v41  ;;  %v3497_v20 = vpop.f32.mrf.mxu1 }
 0xb63   : > { %3510 = vmatprep.mubr.msk.bf16.mxu1 %vm702_vm2, %v2331_v1  ;;  %v3524_v56 = vpop.f32.mrf.mxu0 }
 0xb64   : > { %3511 = vmatmul.mubr.msk.bf16.gmra.mxu1 %vm702_vm2, %v2332_v55  ;;  %v2640_v29 = vsel %vm702_vm2, %v2526_v21, -inf }
 0xb65   : > { %2641 = vmax.xlane.f32.xlu0 %v2640_v29  ;;  %v2528_v53 = vpop.f32.mrf.mxu0  ;;  %3528 = vmatprep.mubr.msk.bf16.mxu1 %vm4052_vm1, %v4051_v2 }
 0xb66   : > { %v2529_v63 = vadd.f32 %v2528_v53, %v4757_v35 }
 0xb67   : > { %v3525_v7 = vpop.f32.mrf.mxu0 }
 0xb68   : > { %v2643_v9 = vsel %vm702_vm2, %v2529_v63, -inf }
 0xb69   : > { %2644 = vmax.xlane.f32.xlu0 %v2643_v9  ;;  %v2627_v48 = vpop.f32.mrf.mxu0 }
 0xb6a   : > { %v2628_v1 = vadd.f32 %v2627_v48, %v4754_v41 }
 0xb6b   : > { %v3536_v3 = vpop.f32.mrf.mxu0 }
 0xb6c   : > { %3529 = vmatmul.mubr.msk.bf16.vlgmr.msra.gmra.mxu1 %vm702_vm2, %v2533_v10  ;;  %v2652_v20 = vsel %vm702_vm2, %v2628_v1, -inf }
 0xb6d   : > { %v2630_v57 = vpop.f32.mrf.mxu0  ;;  %3540 = vmatprep.mubr.msk.bf16.mxu1 %vm4052_vm1, %v4051_v2 }
 0xb6f   : > { %v3537_v16 = vpop.f32.mrf.mxu0 }
 0xbe6   : > { %v2636_v11 = vpop.xlane.xlu0 %2635 }
 0xbe7   : > { %v2658_v38 = vsub.f32 %v2475_v0, %v2636_v11 }
 0xbe9   : > { %v2666_v62 = vmul.f32 1.442695, %v2658_v38 }
 0xbea   : > { %v2639_v18 = vpop.xlane.xlu1 %2638 }
 0xbeb   : > { %v3508_v36 = vpop.f32.mrf.mxu1  ;;  %v2659_v61 = vsub.f32 %v2478_v40, %v2639_v18  ;;  %3803 = vpow2.f32 %v2666_v62 }
 0xbec   : > { %v4777_v54 = vadd.f32 %v3508_v36, %v1820_v33 }
 0xbed   : > { %v2388_v8 = vpop.f32.mrf.mxu1  ;;  %v2668_v42 = vmul.f32 1.442695, %v2659_v61 }
 0xbee   : > { %v4781_v14 = vadd.f32 %v2388_v8, %v1812_v51  ;;  %v2642_v59 = vpop.xlane.xlu0 %2641 }
 0xbef   : > { %v3509_v19 = vpop.f32.mrf.mxu1  ;;  %v2660_v6 = vsub.f32 %v2526_v21, %v2642_v59  ;;  %3805 = vpow2.f32 %v2668_v42  ;;  %v2631_v21 = vadd.f32 %v2630_v57, %v4757_v35 }
 0xbf0   : > { %v4785_v47 = vadd.f32 %v3509_v19, %v1823_v12 }
 0xbf1   : > { %v2391_v30 = vpop.f32.mrf.mxu1  ;;  %v2670_v0 = vmul.f32 1.442695, %v2660_v6 }
 0xbf2   : > { %v4787_v60 = vadd.f32 %v2391_v30, %v1815_v26  ;;  %v2645_v58 = vpop.xlane.xlu0 %2644 }
 0xbf3   : > { %v2661_v40 = vsub.f32 %v2529_v63, %v2645_v58  ;;  %3807 = vpow2.f32 %v2670_v0  ;;  %v2655_v63 = vsel %vm702_vm2, %v2631_v21, -inf }
 0xbf5   : > { %v2672_v17 = vmul.f32 1.442695, %v2661_v40 }
 0xbf7   : > { %3809 = vpow2.f32 %v2672_v17 }
 0xbf8   : > { %v4812_v29 = vpop.eup %3803 }
 0xbfc   : > { %v3806_v53 = vpop.eup %3805 }
 0xc00   : > { %v3808_v7 = vpop.eup %3807 }
 0xc01   : > { %v2688_v9 = vsel %vm702_vm2, %v3808_v7, 0.0 }
 0xc04   : > { %v3810_v48 = vpop.eup %3809 }
 0xc05   : > { %v2691_v10 = vsel %vm702_vm2, %v3810_v48, 0.0 }
 0xc24   : > { %v3512_v13 = vpop.f32.mrf.mxu1 }
 0xc25   : > { %v4793_v25 = vadd.f32 %v3512_v13, %v1836_v34 }
 0xc26   : > { %v2404_v43 = vpop.f32.mrf.mxu1 }
 0xc27   : > { %v4797_v45 = vadd.f32 %v2404_v43, %v1828_v49 }
 0xc28   : > { %v3513_v4 = vpop.f32.mrf.mxu1 }
 0xc29   : > { %v4801_v32 = vadd.f32 %v3513_v4, %v1839_v15 }
 0xc2a   : > { %v2407_v5 = vpop.f32.mrf.mxu1 }
 0xc2b   : > { %v4803_v46 = vadd.f32 %v2407_v5, %v1831_v27 }
 0xc2c   : > { %v2576_v50 = vpop.f32.mrf.mxu1 }
 0xc2d   : > { %v2577_v23 = vadd.f32 %v2576_v50, %v4754_v41  ;;  %v2682_v41 = vsel %vm702_vm2, %v4812_v29, 0.0 }
 0xc2e   : > { %v3530_v31 = vpop.f32.mrf.mxu1 }
 0xc2f   : > { %v2646_v44 = vsel %vm702_vm2, %v2577_v23, -inf }
 0xc30   : > { %2647 = vmax.xlane.f32.xlu0 %v2646_v44  ;;  %v2579_v55 = vpop.f32.mrf.mxu1 }
 0xc31   : > { %v2580_v28 = vadd.f32 %v2579_v55, %v4757_v35  ;;  %v2685_v35 = vsel %vm702_vm2, %v3806_v53, 0.0 }
 0xc32   : > { %v3531_v24 = vpop.f32.mrf.mxu1 }
 0xc33   : > { %v2649_v56 = vsel %vm702_vm2, %v2580_v28, -inf }
 0xc34   : > { %2653 = vmax.xlane.f32.xlu0 %v2652_v20  ;;  %2650 = vmax.xlane.f32.xlu1 %v2649_v56 }
 0xc38   : > { %2683 = vadd.xlane.f32.xlu0 %v2682_v41  ;;  %2656 = vmax.xlane.f32.xlu1 %v2655_v63 }
 0xc3c   : > { %2689 = vadd.xlane.f32.xlu0 %v2688_v9  ;;  %2686 = vadd.xlane.f32.xlu1 %v2685_v35  ;;  %v3690_v9 = vld [vmem:[#allocation10 + $0x18] sm:$0xff]  }
 0xc40   : > { %2692 = vadd.xlane.f32.xlu1 %v2691_v10 }
 0xcb9   : > { %v2648_v3 = vpop.xlane.xlu0 %2647 }
 0xcba   : > { %v2662_v57 = vsub.f32 %v2577_v23, %v2648_v3 }
 0xcbc   : > { %v2674_v51 = vmul.f32 1.442695, %v2662_v57 }
 0xcbd   : > { %v2654_v16 = vpop.xlane.xlu0 %2653  ;;  %v2651_v33 = vpop.xlane.xlu1 %2650 }
 0xcbe   : > { %v2664_v36 = vsub.f32 %v2628_v1, %v2654_v16  ;;  %v2663_v34 = vsub.f32 %v2580_v28, %v2651_v33 }
 0xcc0   : > { %v2678_v8 = vmul.f32 1.442695, %v2664_v36  ;;  %v2676_v62 = vmul.f32 1.442695, %v2663_v34 }
 0xcc1   : > { %v2657_v12 = vpop.xlane.xlu1 %2656  ;;  %v2684_v49 = vpop.xlane.xlu0 %2683 }
 0xcc2   : > { %3811 = vpow2.f32 %v2678_v8  ;;  %v2665_v19 = vsub.f32 %v2631_v21, %v2657_v12 }
 0xcc3   : > { %3813 = vpow2.f32 %v2674_v51 }
 0xcc4   : > { %v2680_v26 = vmul.f32 1.442695, %v2665_v19 }
 0xcc5   : > { %v2687_v13 = vpop.xlane.xlu1 %2686 }
 0xcc6   : > { %3815 = vpow2.f32 %v2680_v26 }
 0xcc7   : > { %3817 = vpow2.f32 %v2676_v62 }
 0xcc8   : > { %3819 = vrcp.f32 %v2687_v13 }
 0xcc9   : > { %v2693_v15 = vpop.xlane.xlu1 %2692 }
 0xcca   : > { %3821 = vrcp.f32 %v2693_v15 }
 0xccb   : > { %3823 = vrcp.f32 %v2684_v49 }
 0xccf   : > { %v3812_v30 = vpop.eup %3811 }
 0xcd0   : > { %v2700_v11 = vsel %vm702_vm2, %v3812_v30, 0.0  ;;  %v4821_v59 = vpop.eup %3813 }
 0xcd1   : > { %2701 = vadd.xlane.f32.xlu0 %v2700_v11  ;;  %v2694_v18 = vsel %vm702_vm2, %v4821_v59, 0.0 }
 0xcd3   : > { %v3816_v38 = vpop.eup %3815 }
 0xcd4   : > { %v2703_v61 = vsel %vm702_vm2, %v3816_v38, 0.0  ;;  %v3818_v6 = vpop.eup %3817 }
 0xcd5   : > { %2695 = vadd.xlane.f32.xlu0 %v2694_v18  ;;  %2704 = vadd.xlane.f32.xlu1 %v2703_v61  ;;  %v2697_v58 = vsel %vm702_vm2, %v3818_v6, 0.0 }
 0xce6   : > { %2773 = vrot.lane.b32.xlu1 %v4373_v37, %s4059_s24  ;;  %v2690_v37 = vpop.xlane.xlu0 %2689 }
 0xce7   : > { %3825 = vrcp.f32 %v2690_v37 }
 0xcea   : > { %2820 = vrot.lane.b32.xlu1 %v4383_v52, %s4059_s24 }
 0xceb   : > { %2726 = vrot.lane.b32.xlu0 %v4365_v22, %s4059_s24  ;;  %v3820_v22 = vpop.eup %3819 }
 0xcec   : > { %v3822_v42 = vpop.eup %3821  ;;  %v2715_v27 = vmul.f32 %v3820_v22, %v3806_v53 }
 0xced   : > { %v3824_v43 = vpop.eup %3823  ;;  %v2717_v5 = vmul.f32 %v3822_v42, %v3810_v48 }
 0xcf4   : > { %v3826_v4 = vpop.eup %3825 }
 0xcf5   : > { %v2716_v23 = vmul.f32 %v3826_v4, %v3808_v7 }
 0xcf7   : > { %v2723_v1 = vpack.c.bf16 %v2717_v5, %v2716_v23 }
 0xd0e   : > { %2698 = vadd.xlane.f32.xlu1 %v2697_v58 }
 0xd1f   : > { %2867 = vrot.lane.b32.xlu1 %v4391_v39, %s4059_s24  ;;  %v2714_v39 = vmul.f32 %v3824_v43, %v4812_v29 }
 0xd21   : > { %v2722_v31 = vpack.c.bf16 %v2715_v27, %v2714_v39 }
 0xd5a   : > { %v2702_v52 = vpop.xlane.xlu0 %2701 }
 0xd5e   : > { %v2696_v0 = vpop.xlane.xlu0 %2695  ;;  %v2705_v40 = vpop.xlane.xlu1 %2704 }
 0xd5f   : > { %3827 = vrcp.f32 %v2705_v40 }
 0xd60   : > { %3829 = vrcp.f32 %v2702_v52 }
 0xd61   : > { %3831 = vrcp.f32 %v2696_v0 }
 0xd62   : > { %v2727_v17 = vpop.permute.xlu0 %2726  ;;  %v2774_v50 = vpop.permute.xlu1 %2773 }
 0xd63   : > { %3539 = vmatpush3.bf16.msra.mxu1 %v2727_v17  ;;  %3545 = vmatpush3.bf16.msra.mxu0 %v2774_v50 }
 0xd64   : > { %3550 = vmatprep.subr.bf16.mxu1 %v4051_v2  ;;  %3556 = vmatprep.subr.bf16.mxu0 %v4051_v2 }
 0xd66   : > { %3541 = vmatmul.mubr.msk.bf16.vlgmr.msra.gmra.mxu1 %vm702_vm2, %v2722_v31  ;;  %3547 = vmatmul.mubr.msk.bf16.vlgmr.msra.gmra.mxu0 %vm702_vm2, %v2723_v1  ;;  %v2821_v44 = vpop.permute.xlu1 %2820 }
 0xd67   : > { %3551 = vmatpush3.bf16.msra.mxu1 %v2821_v44  ;;  %3558 = vmatprep.mubr.msk.bf16.mxu0 %vm4052_vm1, %v4051_v2 }
 0xd68   : > { %3552 = vmatprep.mubr.msk.bf16.mxu1 %vm4052_vm1, %v4051_v2  ;;  %3562 = vmatprep.subr.bf16.mxu1 %v3690_v9 }
 0xd6c   : > { %v3828_v55 = vpop.eup %3827 }
 0xd6d   : > { %v3830_v24 = vpop.eup %3829  ;;  %v2721_v21 = vmul.f32 %v3828_v55, %v3816_v38 }
 0xd6e   : > { %v2720_v56 = vmul.f32 %v3830_v24, %v3812_v30  ;;  %v3832_v53 = vpop.eup %3831 }
 0xd6f   : > { %v2718_v63 = vmul.f32 %v3832_v53, %v4821_v59 }
 0xd70   : > { %v2725_v29 = vpack.c.bf16 %v2721_v21, %v2720_v56 }
 0xd97   : > { %v2699_v28 = vpop.xlane.xlu1 %2698 }
 0xd98   : > { %3833 = vrcp.f32 %v2699_v28 }
 0xd9b   : > { %v2868_v20 = vpop.permute.xlu1 %2867 }
 0xd9c   : > { %3557 = vmatpush3.bf16.msra.mxu0 %v2868_v20 }
 0xd9f   : > { %3559 = vmatmul.mubr.msk.bf16.vlgmr.msra.gmra.mxu0 %vm702_vm2, %v2725_v29 }
 0xda5   : > { %v3834_v41 = vpop.eup %3833 }
 0xda6   : > { %v2719_v7 = vmul.f32 %v3834_v41, %v3818_v6  ;;  %v3245_v6 = vld [vmem:[%s4928_s7] ss:$0 sm:$0xff] }
 0xda8   : > { %v2724_v2 = vpack.c.bf16 %v2719_v7, %v2718_v63 }
 0xdaa   : > { %3553 = vmatmul.mubr.msk.bf16.vlgmr.msra.gmra.mxu1 %vm702_vm2, %v2724_v2 }
 0xdab   : > { %3563 = vmatpush3.bf16.msra.mxu1 %v3690_v9 }
 0xe26   : > { %v2766_v35 = vpop.f32.mrf.mxu1  ;;  %v2813_v48 = vpop.f32.mrf.mxu0 }
 0xe28   : > { %v3542_v10 = vpop.f32.mrf.mxu1  ;;  %v3548_v3 = vpop.f32.mrf.mxu0 }
 0xe2a   : > { %v2769_v57 = vpop.f32.mrf.mxu1  ;;  %v2816_v16 = vpop.f32.mrf.mxu0 }
 0xe2b   : > { %v2914_v33 = vpack.c.bf16 %v2769_v57, %v2766_v35  ;;  %v2915_v36 = vpack.c.bf16 %v2816_v16, %v2813_v48 }
 0xe2c   : > { %v3543_v51 = vpop.f32.mrf.mxu1  ;;  %v3549_v8 = vpop.f32.mrf.mxu0 }
 0xe2d   : > { %3564 = vmatprep.mubr.msk.bf16.mxu1 %vm702_vm2, %v2914_v33 }
 0xe2e   : > { %3565 = vmatmul.mubr.msk.bf16.vlgmr.msra.gmra.mxu1 %vm702_vm2, %v2915_v36 }
 0xe5f   : > { %v2907_v12 = vpop.f32.mrf.mxu0 }
 0xe61   : > { %v3560_v19 = vpop.f32.mrf.mxu0 }
 0xe63   : > { %v2910_v26 = vpop.f32.mrf.mxu0 }
 0xe64   : > { %v2917_v61 = vpack.c.bf16 %v2910_v26, %v2907_v12 }
 0xe65   : > { %v3561_v30 = vpop.f32.mrf.mxu0 }
 0xe6a   : > { %v2860_v11 = vpop.f32.mrf.mxu1 }
 0xe6c   : > { %v3554_v59 = vpop.f32.mrf.mxu1 }
 0xe6e   : > { %v2863_v38 = vpop.f32.mrf.mxu1 }
 0xe6f   : > { %v2916_v18 = vpack.c.bf16 %v2863_v38, %v2860_v11 }
 0xe70   : > { %v3555_v34 = vpop.f32.mrf.mxu1 }
 0xe71   : > { %3568 = vmatprep.mubr.msk.bf16.mxu1 %vm702_vm2, %v2916_v18 }
 0xe72   : > { %3569 = vmatmul.mubr.msk.bf16.gmra.mxu1 %vm702_vm2, %v2917_v61 }
 0xeee   : > { %v3566_v62 = vpop.f32.mrf.mxu1 }
 0xeef   : > { %v3006_v58 = vadd.f32 %v3566_v62, %v4777_v54 }
 0xef0   : > { %v2973_v13 = vpop.f32.mrf.mxu1 }
 0xef1   : > { %v3021_v49 = vadd.f32 %v3245_v6, %v3006_v58  ;;  %v3004_v15 = vadd.f32 %v2973_v13, %v4781_v14 }
 0xef2   : > { %v3567_v37 = vpop.f32.mrf.mxu1 }
 0xef3   : > { %3029 = vst.msk [vmem:[%s380_s11 + $0x10] sm:$0xff] %vm394_vm0, %v3021_v49  ;;  %v3019_v52 = vadd.f32 %v3245_v6, %v3004_v15  ;;  %v3007_v22 = vadd.f32 %v3567_v37, %v4785_v47 }
 0xef4   : > { %v2976_v42 = vpop.f32.mrf.mxu1 }
 0xef5   : > { %3027 = vst.msk [vmem:[%s380_s11] sm:$0xff] %vm394_vm0, %v3019_v52  ;;  %v3022_v43 = vadd.f32 %v3245_v6, %v3007_v22  ;;  %v3005_v0 = vadd.f32 %v2976_v42, %v4787_v60 }
 0xef7   : > { %3030 = vst.msk [vmem:[%s380_s11 + $0x18] sm:$0xff] %vm394_vm0, %v3022_v43  ;;  %v3020_v54 = vadd.f32 %v3245_v6, %v3005_v0 }
 0xef9   : > { %3028 = vst.msk [vmem:[%s380_s11 + $0x8] sm:$0xff] %vm394_vm0, %v3020_v54 }
 0xf32   : > { %v3570_v14 = vpop.f32.mrf.mxu1 }
 0xf33   : > { %v3010_v40 = vadd.f32 %v3570_v14, %v4793_v25 }
 0xf34   : > { %v2989_v4 = vpop.f32.mrf.mxu1 }
 0xf35   : > { %v3025_v27 = vadd.f32 %v3245_v6, %v3010_v40  ;;  %v3008_v5 = vadd.f32 %v2989_v4, %v4797_v45 }
 0xf36   : > { %v3571_v47 = vpop.f32.mrf.mxu1 }
 0xf37   : > { %3033 = vst.msk [vmem:[%s380_s11 + $0x30] sm:$0xff] %vm394_vm0, %v3025_v27  ;;  %v3023_v17 = vadd.f32 %v3245_v6, %v3008_v5  ;;  %v3011_v60 = vadd.f32 %v3571_v47, %v4801_v32 }
 0xf38   : > { %v2992_v50 = vpop.f32.mrf.mxu1 }
 0xf39   : > { %3031 = vst.msk [vmem:[%s380_s11 + $0x20] sm:$0xff] %vm394_vm0, %v3023_v17  ;;  %v3026_v39 = vadd.f32 %v3245_v6, %v3011_v60  ;;  %v3009_v25 = vadd.f32 %v2992_v50, %v4803_v46 }
 0xf3b   : > { %3034 = vst.msk [vmem:[%s380_s11 + $0x38] sm:$0xff] %vm394_vm0, %v3026_v39  ;;  %v3024_v45 = vadd.f32 %v3245_v6, %v3009_v25 }
 0xf3d   : > { %3032 = vst.msk [vmem:[%s380_s11 + $0x28] sm:$0xff] %vm394_vm0, %v3024_v45 }
 0xf3e   : > { %3980 = shalt.err (!%p3977_p5)
}
 0xf3f   : > { %s3981_s10 = scalar_lea.hbm %s4874_s17, 1024  ;;  %s3985_s19 = scalar_lea.hbm %s4929_s8, 2048 }
 0xf40   : > { %p3982_p6 = scmp.ne.s32.totalorder %s4874_s17, %s3981_s10  ;;  %p3986_p10 = scmp.lt.s32.totalorder %s4874_s17, %s4929_s8 }
 0xf41   : > { %p3987_p2 = scmp.lt.s32.totalorder %s3985_s19, %s3981_s10 }
 0xf42   : > { %p3983_p4 = pnand %p3982_p6, %p4954_p12 }
 0xf43   : > { %p3988_p0 = por %p3987_p2, %p3986_p10 }
 0xf44   : > { %p3984_p8 = pneg %p3983_p4 }
 0xf46   : > { %p3989_p3 = pnand %p3988_p0, %p3984_p8 }
 0xf48   : > { %3992 = shalt.err (!%p3989_p3)
}
 0xf49   : > { %s4061_s26 = smov 128   ;;  %s4062_s25 = smov 8  }
 0xf4a   : > { %3590 = dma.vmem_to_hbm [thread:$0]  (%p4954_p12), %s4876_s13, 1024, %s4874_s17, %s3036_s9, %s4061_s26, %s4061_s26, %s4062_s25  }
 0xf4b PF: > { %s3065_s20 = sand.u32 1, %s4027_s27   ;;  %p4955_p9 = scmp.ne.s32.totalorder %s4939_s12, 0 }
 0xf4c   : > { %p4956_p7 = scmp.ge.s32.totalorder %s4039_s30, 2  ;;  %s3066_s14 = scalar_lea.sflag [#allocation4], %s3065_s20 }
 0xf4e   : > { %p3610_p1 = pnand %p4956_p7, %p4955_p9 }
 0xf50   : > { %p3611_p13 = pneg %p3610_p1 }
 0xf52   : > { %4022 = dma.done.wait (%p3611_p13), %s3066_s14, 1024  }
 0xf53   : > { %4024 = vsyncadd (%p3611_p13), %s3066_s14, 4294966272  ;;  %p23_p11 = scmp.ge.s32.totalorder %s4209_s15, 4   ;;  %s4957_s27 = smov %s4031_s28 }
 0xf54   : > { %s4958_s28 = smov %s4035_s29  ;;  %s4959_s29 = smov %s4218_s21 }
 0xf55   : > { %s4960_s30 = smov %s4209_s15  ;;  %25 = sbr.rel (!%p23_p11) target bundleno = 10 (0xa), region = 119 }
 0xf5a   :  { %3071 = vsyncpa [#allocation3], 1 }
 0xf5b   :  { %3073 = vsyncpa [#allocation3 + $0x1], 1 }
 0xf5c   :  { %3074 = vsyncpa [#allocation6], 1 }
 0xf5d   :  { %3075 = vsyncpa [#allocation9], 1 }
 0xf5e   :  { %3076 = vsyncpa [#allocation4], 1 }
 0xf5f   :  { %3078 = vsyncpa [#allocation4 + $0x1], 1 }

</bundles_post_ra>
